<compile_context>
chip_gen: v7x
topology: tpu7x:2x2x1
jax: 0.10.0
libtpu: 0.0.40
codegen_flags: <defaults>
</compile_context>

<pallas_src>
import jax
import jax.numpy as jnp
import numpy as np
from jax.experimental import pallas as pl
from jax.experimental.pallas import tpu as pltpu

# ----------------------- small synthetic hyper-params -----------------------
B = 2                 # batch
N_FFT = 14            # h.n_fft
F = N_FFT // 2 + 1    # = 8 narrow-band freq bins (conv_pre in_channels)
T = 16                # time frames
C = 32                # h.ConvNeXt_channels
C2 = C // 2
CI = 3 * C            # ConvNeXt block intermediate dim (standard Vocos: 3 * dim)
L = 2                 # h.ConvNeXt_layers
K = 7                 # conv kernel size
PAD = 3               # get_padding(7, 1)
OUT_DIM = N_FFT + 2   # linear_out features == 2 * F
LN_EPS = 1e-6
LAYER_SCALE = 1.0 / L

# ----------------------------- derived constants -----------------------------
M = B * T             # folded batch*time rows
IN2 = 2 * F           # 16  (mag|pha channels)
KIN = K * IN2         # 112 (im2col width)
CENTER = PAD * IN2    # 48  (start of the un-shifted [mag|pha] tap in im2col)

# weight slab (bf16, rows x 128 lanes)
W_LANES = 128
PRE_OFF = 0
def _pw1_off(l): return KIN + l * (C + CI)
def _pw2_off(l): return _pw1_off(l) + C
LIN_OFF = KIN + L * (C + CI)
W_ROWS = LIN_OFF + C                       # = 400

# vector slab (f32, rows x 128 lanes)
V_LANES = 128
VR_BPRE, VR_PREW, VR_PREB, VR_POSTW, VR_POSTB, VR_LINB = 0, 1, 2, 3, 4, 5
VR_BASE, VR_STRIDE = 6, 13                 # per layer: dw_b, bln_w, bln_b,
                                           # pw1_b, pw2_b, gam, dw_w[0..6]
V_ROWS = VR_BASE + L * VR_STRIDE           # = 32


# --------------------------------- kernel -----------------------------------
def vocos_bwe_kernel(xi_ref, cond_ref, shift_ref, w_ref, v_ref, out_ref):
    f32, bf16 = jnp.float32, jnp.bfloat16

    def vrow(i, width):                    # static row of the vector slab
        return v_ref[i:i + 1, 0:width]     # (1, width) f32

    def norm(x):                           # LayerNorm without affine
        mu = jnp.mean(x, axis=-1, keepdims=True)
        xc = x - mu
        var = jnp.mean(xc * xc, axis=-1, keepdims=True)
        return xc * jax.lax.rsqrt(var + LN_EPS)

    xi = xi_ref[...]                       # (M, K*2F) f32 im2col matrix
    cond = cond_ref[...]                   # (M, C)     f32
    shift = shift_ref[...]                 # (K*M, M)   f32 0/1 shift matrix

    # ---------------- fused pre-convs (one matmul) + per-half LayerNorm -----
    y = jnp.dot(xi.astype(bf16), w_ref[PRE_OFF:PRE_OFF + KIN, 0:C],
                preferred_element_type=f32) + vrow(VR_BPRE, C)        # (M, C)
    x = jnp.concatenate([norm(y[:, 0:C2]), norm(y[:, C2:C])], axis=-1)
    x = x * vrow(VR_PREW, C) + vrow(VR_PREB, C)

    # ---------------- ConvNeXt blocks ----------------
    for l in range(L):
        base = VR_BASE + l * VR_STRIDE
        x = x + cond
        residual = x

        # depthwise conv (kernel 7, pad 3, groups=C): one shift-matrix matmul
        # yields all K shifted & batch-edge-masked copies, then K per-channel
        # elementwise FMAs.
        ysh = jnp.dot(shift, x, preferred_element_type=f32)           # (K*M, C)
        h = jnp.zeros((M, C), f32) + vrow(base + 0, C)                # dw bias
        for k in range(K):
            h = h + ysh[k * M:(k + 1) * M, :] * vrow(base + 6 + k, C)

        h = norm(h) * vrow(base + 1, C) + vrow(base + 2, C)
        h = jnp.dot(h.astype(bf16), w_ref[_pw1_off(l):_pw1_off(l) + C, 0:CI],
                    preferred_element_type=f32) + vrow(base + 3, CI)
        # TODO(synk): PyTorch nn.GELU() default is the exact erf form; tanh
        # approximation is used here for a guaranteed Mosaic lowering.
        h = jax.nn.gelu(h, approximate=True)
        h = jnp.dot(h.astype(bf16), w_ref[_pw2_off(l):_pw2_off(l) + CI, 0:C],
                    preferred_element_type=f32) + vrow(base + 4, C)
        h = h * vrow(base + 5, C)                                     # layer scale
        x = residual + h

    # ---------------- post norm + linear head + fused outputs ----------------
    x = norm(x) * vrow(VR_POSTW, C) + vrow(VR_POSTB, C)
    yo = jnp.dot(x.astype(bf16), w_ref[LIN_OFF:LIN_OFF + C, 0:OUT_DIM],
                 preferred_element_type=f32) + vrow(VR_LINB, OUT_DIM)  # (M, 2F)

    mag_nb = xi[:, CENTER:CENTER + F]       # exact f32 copy of the input mag
    mag_wb = mag_nb + yo[:, 0:F]
    pha_wb = yo[:, F:2 * F]
    e = jnp.exp(mag_wb)
    # single lane-dense store: [mag_wb | pha_wb | com_re | com_im]
    out_ref[...] = jnp.concatenate(
        [mag_wb, pha_wb, e * jnp.cos(pha_wb), e * jnp.sin(pha_wb)], axis=-1)


# --------------------------- parameter packing (glue) -------------------------
def _make_shift_matrix():
    s = np.zeros((K * M, M), np.float32)
    for k in range(K):
        d = k - PAD
        for b in range(B):
            for t in range(T):
                ts = t + d
                if 0 <= ts < T:
                    s[k * M + b * T + t, b * T + ts] = 1.0
    return s


_SHIFT_NP = _make_shift_matrix()


def pack_params(p):
    f32 = jnp.float32

    # fused block-diagonal pre-conv weight: (K, 2F, C) -> (K*2F, C)
    wf = jnp.zeros((K, IN2, C), f32)
    wf = wf.at[:, :F, :C2].set(p["wpm"])
    wf = wf.at[:, F:, C2:].set(p["wpp"])
    wf = wf.reshape(KIN, C)

    def pad_w(a):
        return jnp.pad(a, ((0, 0), (0, W_LANES - a.shape[1])))

    blocks = [pad_w(wf)]
    for l in range(L):
        blocks.append(pad_w(p["pw1_w"][l]))
        blocks.append(pad_w(p["pw2_w"][l]))
    blocks.append(pad_w(p["lin_w"]))
    wslab = jnp.concatenate(blocks, axis=0).astype(jnp.bfloat16)   # (400, 128)

    def vrow(v):
        v = jnp.reshape(jnp.asarray(v, f32), (1, -1))
        return jnp.pad(v, ((0, 0), (0, V_LANES - v.shape[1])))

    rows = [
        vrow(jnp.concatenate([p["bpm"], p["bpp"]], axis=-1)),
        vrow(jnp.concatenate([p["nm_w"], p["np_w"]], axis=-1)),
        vrow(jnp.concatenate([p["nm_b"], p["np_b"]], axis=-1)),
        vrow(p["post_w"]), vrow(p["post_b"]), vrow(p["lin_b"]),
    ]
    for l in range(L):
        rows += [vrow(p["dw_b"][l]), vrow(p["bln_w"][l]), vrow(p["bln_b"][l]),
                 vrow(p["pw1_b"][l]), vrow(p["pw2_b"][l]), vrow(p["gam"][l])]
        rows += [vrow(p["dw_w"][l, k]) for k in range(K)]
    vslab = jnp.concatenate(rows, axis=0)                           # (32, 128)

    return {"wslab": wslab, "vslab": vslab, "shift": jnp.asarray(_SHIFT_NP)}


# ------------------------------ wrapper (glue) -------------------------------
def vocos_bwe_forward(mag_nb, pha_nb, cond_mag, packed):
    """mag_nb/pha_nb: (B, F, T), cond_mag: (B, C, T)  (PyTorch NCW layout)."""
    mag_t = jnp.transpose(mag_nb, (0, 2, 1))     # (B, T, F)
    pha_t = jnp.transpose(pha_nb, (0, 2, 1))     # (B, T, F)
    cond_t = jnp.transpose(cond_mag, (0, 2, 1))  # (B, T, C)

    # im2col for the fused pre-conv matmul (per-batch zero padding here)
    mp = jnp.concatenate([mag_t, pha_t], axis=-1)                    # (B, T, 2F)
    mp_pad = jnp.pad(mp, ((0, 0), (PAD, PAD), (0, 0)))               # (B, T+6, 2F)
    xi = jnp.concatenate([mp_pad[:, k:k + T, :] for k in range(K)], axis=-1)
    xi = xi.reshape(M, KIN)                                          # (32, 112)
    cond_flat = cond_t.reshape(M, C)                                 # (32, 32)

    out = pl.pallas_call(
        vocos_bwe_kernel,
        grid=(1,),
        in_specs=[
            pl.BlockSpec((M, KIN), lambda i: (0, 0)),
            pl.BlockSpec((M, C), lambda i: (0, 0)),
            pl.BlockSpec((K * M, M), lambda i: (0, 0)),
            pl.BlockSpec((W_ROWS, W_LANES), lambda i: (0, 0)),
            pl.BlockSpec((V_ROWS, V_LANES), lambda i: (0, 0)),
        ],
        out_specs=pl.BlockSpec((M, 4 * F), lambda i: (0, 0)),
        out_shape=jax.ShapeDtypeStruct((M, 4 * F), jnp.float32),
        compiler_params=pltpu.CompilerParams(dimension_semantics=("arbitrary",)),
    )(xi, cond_flat, packed["shift"], packed["wslab"], packed["vslab"])

    o = out.reshape(B, T, 4 * F)
    tr = lambda a: jnp.transpose(a, (0, 2, 1))
    mag_wb = tr(o[..., 0:F])
    pha_wb = tr(o[..., F:2 * F])
    com_wb = jnp.stack([tr(o[..., 2 * F:3 * F]), tr(o[..., 3 * F:4 * F])],
                       axis=-1)
    return mag_wb, pha_wb, com_wb


# --------------------------- deterministic params ----------------------------
def init_params(key):
    ks = jax.random.split(key, 6)
    std = 0.02
    f32 = jnp.float32
    return {
        # trunc_normal_(std=0.02) ~ modeled as normal(0, 0.02); biases -> 0
        "wpm": std * jax.random.normal(ks[0], (K, F, C2), f32),
        "bpm": jnp.zeros((1, C2), f32),
        "wpp": std * jax.random.normal(ks[1], (K, F, C2), f32),
        "bpp": jnp.zeros((1, C2), f32),
        "nm_w": jnp.ones((1, C2), f32), "nm_b": jnp.zeros((1, C2), f32),
        "np_w": jnp.ones((1, C2), f32), "np_b": jnp.zeros((1, C2), f32),
        "dw_w": std * jax.random.normal(ks[2], (L, K, C), f32),
        "dw_b": jnp.zeros((L, 1, C), f32),
        "bln_w": jnp.ones((L, 1, C), f32), "bln_b": jnp.zeros((L, 1, C), f32),
        "pw1_w": std * jax.random.normal(ks[3], (L, C, CI), f32),
        "pw1_b": jnp.zeros((L, 1, CI), f32),
        "pw2_w": std * jax.random.normal(ks[4], (L, CI, C), f32),
        "pw2_b": jnp.zeros((L, 1, C), f32),
        "gam": jnp.full((L, 1, C), LAYER_SCALE, f32),
        "post_w": jnp.ones((1, C), f32), "post_b": jnp.zeros((1, C), f32),
        "lin_w": std * jax.random.normal(ks[5], (C, OUT_DIM), f32),
        "lin_b": jnp.zeros((1, OUT_DIM), f32),
    }


# ----------------------------- pure-JAX reference ----------------------------
def reference_forward(mag_nb, pha_nb, cond_mag, p):
    hp = jax.lax.Precision.HIGHEST

    def layernorm(x, w, b):
        mu = jnp.mean(x, -1, keepdims=True)
        xc = x - mu
        var = jnp.mean(xc * xc, -1, keepdims=True)
        return xc * jax.lax.rsqrt(var + LN_EPS) * w + b

    def conv1d(x_t, w, b):  # x_t (B, T, Fin)
        xpad = jnp.pad(x_t, ((0, 0), (PAD, PAD), (0, 0)))
        out = jnp.zeros((x_t.shape[0], T, w.shape[2]), jnp.float32) + b
        for k in range(K):
            out = out + jnp.einsum("btf,fc->btc", xpad[:, k:k + T, :], w[k],
                                   precision=hp)
        return out

    mag_t = jnp.transpose(mag_nb, (0, 2, 1))
    pha_t = jnp.transpose(pha_nb, (0, 2, 1))
    cond_t = jnp.transpose(cond_mag, (0, 2, 1))

    xm = layernorm(conv1d(mag_t, p["wpm"], p["bpm"]), p["nm_w"], p["nm_b"])
    xp = layernorm(conv1d(pha_t, p["wpp"], p["bpp"]), p["np_w"], p["np_b"])
    x = jnp.concatenate([xm, xp], axis=-1)

    for l in range(L):
        x = x + cond_t
        res = x
        xpad = jnp.pad(x, ((0, 0), (PAD, PAD), (0, 0)))
        h = jnp.zeros_like(x) + p["dw_b"][l]
        for k in range(K):
            h = h + xpad[:, k:k + T, :] * p["dw_w"][l, k][None, None, :]
        h = layernorm(h, p["bln_w"][l], p["bln_b"][l])
        h = jnp.einsum("btc,cd->btd", h, p["pw1_w"][l], precision=hp) + p["pw1_b"][l]
        h = jax.nn.gelu(h, approximate=True)
        h = jnp.einsum("btd,dc->btc", h, p["pw2_w"][l], precision=hp) + p["pw2_b"][l]
        h = p["gam"][l] * h
        x = res + h

    x = layernorm(x, p["post_w"], p["post_b"])
    y = jnp.einsum("btc,co->bto", x, p["lin_w"], precision=hp) + p["lin_b"]
    mag_out, pha_wb_t = y[..., :F], y[..., F:]
    mag_wb_t = mag_t + mag_out
    e = jnp.exp(mag_wb_t)
    mag_wb = jnp.transpose(mag_wb_t, (0, 2, 1))
    pha_wb = jnp.transpose(pha_wb_t, (0, 2, 1))
    com_wb = jnp.stack(
        [jnp.transpose(e * jnp.cos(pha_wb_t), (0, 2, 1)),
         jnp.transpose(e * jnp.sin(pha_wb_t), (0, 2, 1))], axis=-1)
    return mag_wb, pha_wb, com_wb


# ----------------------------------- main ------------------------------------
if __name__ == "__main__":
    key = jax.random.PRNGKey(0)
    k_in, k_par = jax.random.split(key)
    ki = jax.random.split(k_in, 3)
    mag_nb = jax.random.normal(ki[0], (B, F, T), jnp.float32)
    pha_nb = jax.random.normal(ki[1], (B, F, T), jnp.float32)
    cond_mag = jax.random.normal(ki[2], (B, C, T), jnp.float32)
    params = init_params(k_par)
    packed = pack_params(params)

    fwd = jax.jit(vocos_bwe_forward)
    mag_wb, pha_wb, com_wb = fwd(mag_nb, pha_nb, cond_mag, packed)
    jax.block_until_ready((mag_wb, pha_wb, com_wb))

    ref = reference_forward(mag_nb, pha_nb, cond_mag, params)
    for got, want in zip((mag_wb, pha_wb, com_wb), ref):
        np.testing.assert_allclose(np.asarray(got), np.asarray(want),
                                   rtol=2e-2, atol=2e-2)

    assert mag_wb.shape == (B, F, T)
    assert pha_wb.shape == (B, F, T)
    assert com_wb.shape == (B, F, T, 2)
    print("KERNEL_OK")
</pallas_src>

<mosaic_0001>
module attributes {stable_mosaic.version = 11 : i64} {
  func.func @vocos_bwe_kernel(%arg0: i32, %arg1: memref<32x112xf32, #tpu.memory_space<vmem>>, %arg2: memref<32x32xf32, #tpu.memory_space<vmem>>, %arg3: memref<224x32xf32, #tpu.memory_space<vmem>>, %arg4: memref<400x128xbf16, #tpu.memory_space<vmem>>, %arg5: memref<32x128xf32, #tpu.memory_space<vmem>>, %arg6: memref<32x32xf32, #tpu.memory_space<vmem>>) attributes {dimension_semantics = [#tpu.dimension_semantics<arbitrary>], iteration_bounds = array<i64: 1>, scalar_prefetch = 0 : i64, scratch_operands = 0 : i64, tpu.core_type = #tpu.core_type<tc>, window_params = [{pipeline_mode = #tpu.pipeline_mode<synchronous>, transform_indices = @transform_0, window_bounds = array<i64: 32, 112>}, {pipeline_mode = #tpu.pipeline_mode<synchronous>, transform_indices = @transform_1, window_bounds = array<i64: 32, 32>}, {pipeline_mode = #tpu.pipeline_mode<synchronous>, transform_indices = @transform_2, window_bounds = array<i64: 224, 32>}, {pipeline_mode = #tpu.pipeline_mode<synchronous>, transform_indices = @transform_3, window_bounds = array<i64: 400, 128>}, {pipeline_mode = #tpu.pipeline_mode<synchronous>, transform_indices = @transform_4, window_bounds = array<i64: 32, 128>}, {pipeline_mode = #tpu.pipeline_mode<synchronous>, transform_indices = @transform_5, window_bounds = array<i64: 32, 32>}]} {
    %c0 = arith.constant 0 : index
    %c0_0 = arith.constant 0 : index
    %0 = vector.load %arg1[%c0, %c0_0] : memref<32x112xf32, #tpu.memory_space<vmem>>, vector<32x112xf32>
    %c0_1 = arith.constant 0 : index
    %c0_2 = arith.constant 0 : index
    %1 = vector.load %arg2[%c0_1, %c0_2] : memref<32x32xf32, #tpu.memory_space<vmem>>, vector<32x32xf32>
    %c0_3 = arith.constant 0 : index
    %c0_4 = arith.constant 0 : index
    %2 = vector.load %arg3[%c0_3, %c0_4] : memref<224x32xf32, #tpu.memory_space<vmem>>, vector<224x32xf32>
    %3 = arith.truncf %0 : vector<32x112xf32> to vector<32x112xbf16>
    %c0_5 = arith.constant 0 : index
    %c0_6 = arith.constant 0 : index
    %4 = vector.load %arg4[%c0_5, %c0_6] : memref<400x128xbf16, #tpu.memory_space<vmem>>, vector<112x32xbf16>
    %cst = arith.constant dense<0.000000e+00> : vector<32x32xf32>
    %5 = tpu.matmul %3, %4, %cst {dimension_numbers = #tpu.dot_dimension_numbers<[1], [0], [0], [1], [0, 0, 1, 1], [], []>} : vector<32x112xbf16>, vector<112x32xbf16>, vector<32x32xf32> -> vector<32x32xf32>
    %c0_7 = arith.constant 0 : index
    %c0_8 = arith.constant 0 : index
    %6 = vector.load %arg5[%c0_7, %c0_8] : memref<32x128xf32, #tpu.memory_space<vmem>>, vector<1x32xf32>
    %7 = vector.broadcast %6 : vector<1x32xf32> to vector<32x32xf32>
    %8 = arith.addf %5, %7 : vector<32x32xf32>
    %9 = vector.extract_strided_slice %8 {offsets = [0, 0], sizes = [32, 16], strides = [1, 1]} : vector<32x32xf32> to vector<32x16xf32>
    %cst_9 = arith.constant dense<0.000000e+00> : vector<32xf32>
    %10 = vector.multi_reduction <add>, %9, %cst_9 [1] : vector<32x16xf32> to vector<32xf32>
    %11 = vector.shape_cast %10 : vector<32xf32> to vector<32x1xf32>
    %cst_10 = arith.constant 1.600000e+01 : f32
    %12 = vector.broadcast %cst_10 : f32 to vector<32x1xf32>
    %13 = arith.divf %11, %12 : vector<32x1xf32>
    %14 = vector.broadcast %13 : vector<32x1xf32> to vector<32x16xf32>
    %15 = arith.subf %9, %14 : vector<32x16xf32>
    %16 = arith.mulf %15, %15 : vector<32x16xf32>
    %cst_11 = arith.constant dense<0.000000e+00> : vector<32xf32>
    %17 = vector.multi_reduction <add>, %16, %cst_11 [1] : vector<32x16xf32> to vector<32xf32>
    %18 = vector.shape_cast %17 : vector<32xf32> to vector<32x1xf32>
    %cst_12 = arith.constant 1.600000e+01 : f32
    %19 = vector.broadcast %cst_12 : f32 to vector<32x1xf32>
    %20 = arith.divf %18, %19 : vector<32x1xf32>
    %cst_13 = arith.constant 9.99999997E-7 : f32
    %21 = vector.broadcast %cst_13 : f32 to vector<32x1xf32>
    %22 = arith.addf %20, %21 : vector<32x1xf32>
    %23 = math.rsqrt %22 : vector<32x1xf32>
    %24 = vector.broadcast %23 : vector<32x1xf32> to vector<32x16xf32>
    %25 = arith.mulf %15, %24 : vector<32x16xf32>
    %26 = vector.extract_strided_slice %8 {offsets = [0, 16], sizes = [32, 16], strides = [1, 1]} : vector<32x32xf32> to vector<32x16xf32>
    %cst_14 = arith.constant dense<0.000000e+00> : vector<32xf32>
    %27 = vector.multi_reduction <add>, %26, %cst_14 [1] : vector<32x16xf32> to vector<32xf32>
    %28 = vector.shape_cast %27 : vector<32xf32> to vector<32x1xf32>
    %cst_15 = arith.constant 1.600000e+01 : f32
    %29 = vector.broadcast %cst_15 : f32 to vector<32x1xf32>
    %30 = arith.divf %28, %29 : vector<32x1xf32>
    %31 = vector.broadcast %30 : vector<32x1xf32> to vector<32x16xf32>
    %32 = arith.subf %26, %31 : vector<32x16xf32>
    %33 = arith.mulf %32, %32 : vector<32x16xf32>
    %cst_16 = arith.constant dense<0.000000e+00> : vector<32xf32>
    %34 = vector.multi_reduction <add>, %33, %cst_16 [1] : vector<32x16xf32> to vector<32xf32>
    %35 = vector.shape_cast %34 : vector<32xf32> to vector<32x1xf32>
    %cst_17 = arith.constant 1.600000e+01 : f32
    %36 = vector.broadcast %cst_17 : f32 to vector<32x1xf32>
    %37 = arith.divf %35, %36 : vector<32x1xf32>
    %cst_18 = arith.constant 9.99999997E-7 : f32
    %38 = vector.broadcast %cst_18 : f32 to vector<32x1xf32>
    %39 = arith.addf %37, %38 : vector<32x1xf32>
    %40 = math.rsqrt %39 : vector<32x1xf32>
    %41 = vector.broadcast %40 : vector<32x1xf32> to vector<32x16xf32>
    %42 = arith.mulf %32, %41 : vector<32x16xf32>
    %43 = tpu.concatenate %25, %42 in 1 : vector<32x16xf32>, vector<32x16xf32> -> vector<32x32xf32>
    %c1 = arith.constant 1 : index
    %c0_19 = arith.constant 0 : index
    %44 = vector.load %arg5[%c1, %c0_19] : memref<32x128xf32, #tpu.memory_space<vmem>>, vector<1x32xf32>
    %45 = vector.broadcast %44 : vector<1x32xf32> to vector<32x32xf32>
    %46 = arith.mulf %43, %45 : vector<32x32xf32>
    %c2 = arith.constant 2 : index
    %c0_20 = arith.constant 0 : index
    %47 = vector.load %arg5[%c2, %c0_20] : memref<32x128xf32, #tpu.memory_space<vmem>>, vector<1x32xf32>
    %48 = vector.broadcast %47 : vector<1x32xf32> to vector<32x32xf32>
    %49 = arith.addf %46, %48 : vector<32x32xf32>
    %50 = arith.addf %49, %1 : vector<32x32xf32>
    %cst_21 = arith.constant dense<0.000000e+00> : vector<224x32xf32>
    %51 = tpu.matmul %2, %50, %cst_21 {dimension_numbers = #tpu.dot_dimension_numbers<[1], [0], [0], [1], [0, 0, 1, 1], [], []>} : vector<224x32xf32>, vector<32x32xf32>, vector<224x32xf32> -> vector<224x32xf32>
    %cst_22 = arith.constant 0.000000e+00 : f32
    %52 = vector.broadcast %cst_22 : f32 to vector<32x32xf32>
    %c6 = arith.constant 6 : index
    %c0_23 = arith.constant 0 : index
    %53 = vector.load %arg5[%c6, %c0_23] : memref<32x128xf32, #tpu.memory_space<vmem>>, vector<1x32xf32>
    %54 = vector.broadcast %53 : vector<1x32xf32> to vector<32x32xf32>
    %55 = arith.addf %52, %54 : vector<32x32xf32>
    %56 = vector.extract_strided_slice %51 {offsets = [0, 0], sizes = [32, 32], strides = [1, 1]} : vector<224x32xf32> to vector<32x32xf32>
    %c12 = arith.constant 12 : index
    %c0_24 = arith.constant 0 : index
    %57 = vector.load %arg5[%c12, %c0_24] : memref<32x128xf32, #tpu.memory_space<vmem>>, vector<1x32xf32>
    %58 = vector.broadcast %57 : vector<1x32xf32> to vector<32x32xf32>
    %59 = arith.mulf %56, %58 : vector<32x32xf32>
    %60 = arith.addf %55, %59 : vector<32x32xf32>
    %61 = vector.extract_strided_slice %51 {offsets = [32, 0], sizes = [32, 32], strides = [1, 1]} : vector<224x32xf32> to vector<32x32xf32>
    %c13 = arith.constant 13 : index
    %c0_25 = arith.constant 0 : index
    %62 = vector.load %arg5[%c13, %c0_25] : memref<32x128xf32, #tpu.memory_space<vmem>>, vector<1x32xf32>
    %63 = vector.broadcast %62 : vector<1x32xf32> to vector<32x32xf32>
    %64 = arith.mulf %61, %63 : vector<32x32xf32>
    %65 = arith.addf %60, %64 : vector<32x32xf32>
    %66 = vector.extract_strided_slice %51 {offsets = [64, 0], sizes = [32, 32], strides = [1, 1]} : vector<224x32xf32> to vector<32x32xf32>
    %c14 = arith.constant 14 : index
    %c0_26 = arith.constant 0 : index
    %67 = vector.load %arg5[%c14, %c0_26] : memref<32x128xf32, #tpu.memory_space<vmem>>, vector<1x32xf32>
    %68 = vector.broadcast %67 : vector<1x32xf32> to vector<32x32xf32>
    %69 = arith.mulf %66, %68 : vector<32x32xf32>
    %70 = arith.addf %65, %69 : vector<32x32xf32>
    %71 = vector.extract_strided_slice %51 {offsets = [96, 0], sizes = [32, 32], strides = [1, 1]} : vector<224x32xf32> to vector<32x32xf32>
    %c15 = arith.constant 15 : index
    %c0_27 = arith.constant 0 : index
    %72 = vector.load %arg5[%c15, %c0_27] : memref<32x128xf32, #tpu.memory_space<vmem>>, vector<1x32xf32>
    %73 = vector.broadcast %72 : vector<1x32xf32> to vector<32x32xf32>
    %74 = arith.mulf %71, %73 : vector<32x32xf32>
    %75 = arith.addf %70, %74 : vector<32x32xf32>
    %76 = vector.extract_strided_slice %51 {offsets = [128, 0], sizes = [32, 32], strides = [1, 1]} : vector<224x32xf32> to vector<32x32xf32>
    %c16 = arith.constant 16 : index
    %c0_28 = arith.constant 0 : index
    %77 = vector.load %arg5[%c16, %c0_28] : memref<32x128xf32, #tpu.memory_space<vmem>>, vector<1x32xf32>
    %78 = vector.broadcast %77 : vector<1x32xf32> to vector<32x32xf32>
    %79 = arith.mulf %76, %78 : vector<32x32xf32>
    %80 = arith.addf %75, %79 : vector<32x32xf32>
    %81 = vector.extract_strided_slice %51 {offsets = [160, 0], sizes = [32, 32], strides = [1, 1]} : vector<224x32xf32> to vector<32x32xf32>
    %c17 = arith.constant 17 : index
    %c0_29 = arith.constant 0 : index
    %82 = vector.load %arg5[%c17, %c0_29] : memref<32x128xf32, #tpu.memory_space<vmem>>, vector<1x32xf32>
    %83 = vector.broadcast %82 : vector<1x32xf32> to vector<32x32xf32>
    %84 = arith.mulf %81, %83 : vector<32x32xf32>
    %85 = arith.addf %80, %84 : vector<32x32xf32>
    %86 = vector.extract_strided_slice %51 {offsets = [192, 0], sizes = [32, 32], strides = [1, 1]} : vector<224x32xf32> to vector<32x32xf32>
    %c18 = arith.constant 18 : index
    %c0_30 = arith.constant 0 : index
    %87 = vector.load %arg5[%c18, %c0_30] : memref<32x128xf32, #tpu.memory_space<vmem>>, vector<1x32xf32>
    %88 = vector.broadcast %87 : vector<1x32xf32> to vector<32x32xf32>
    %89 = arith.mulf %86, %88 : vector<32x32xf32>
    %90 = arith.addf %85, %89 : vector<32x32xf32>
    %cst_31 = arith.constant dense<0.000000e+00> : vector<32xf32>
    %91 = vector.multi_reduction <add>, %90, %cst_31 [1] : vector<32x32xf32> to vector<32xf32>
    %92 = vector.shape_cast %91 : vector<32xf32> to vector<32x1xf32>
    %cst_32 = arith.constant 3.200000e+01 : f32
    %93 = vector.broadcast %cst_32 : f32 to vector<32x1xf32>
    %94 = arith.divf %92, %93 : vector<32x1xf32>
    %95 = vector.broadcast %94 : vector<32x1xf32> to vector<32x32xf32>
    %96 = arith.subf %90, %95 : vector<32x32xf32>
    %97 = arith.mulf %96, %96 : vector<32x32xf32>
    %cst_33 = arith.constant dense<0.000000e+00> : vector<32xf32>
    %98 = vector.multi_reduction <add>, %97, %cst_33 [1] : vector<32x32xf32> to vector<32xf32>
    %99 = vector.shape_cast %98 : vector<32xf32> to vector<32x1xf32>
    %cst_34 = arith.constant 3.200000e+01 : f32
    %100 = vector.broadcast %cst_34 : f32 to vector<32x1xf32>
    %101 = arith.divf %99, %100 : vector<32x1xf32>
    %cst_35 = arith.constant 9.99999997E-7 : f32
    %102 = vector.broadcast %cst_35 : f32 to vector<32x1xf32>
    %103 = arith.addf %101, %102 : vector<32x1xf32>
    %104 = math.rsqrt %103 : vector<32x1xf32>
    %105 = vector.broadcast %104 : vector<32x1xf32> to vector<32x32xf32>
    %106 = arith.mulf %96, %105 : vector<32x32xf32>
    %c7 = arith.constant 7 : index
    %c0_36 = arith.constant 0 : index
    %107 = vector.load %arg5[%c7, %c0_36] : memref<32x128xf32, #tpu.memory_space<vmem>>, vector<1x32xf32>
    %108 = vector.broadcast %107 : vector<1x32xf32> to vector<32x32xf32>
    %109 = arith.mulf %106, %108 : vector<32x32xf32>
    %c8 = arith.constant 8 : index
    %c0_37 = arith.constant 0 : index
    %110 = vector.load %arg5[%c8, %c0_37] : memref<32x128xf32, #tpu.memory_space<vmem>>, vector<1x32xf32>
    %111 = vector.broadcast %110 : vector<1x32xf32> to vector<32x32xf32>
    %112 = arith.addf %109, %111 : vector<32x32xf32>
    %113 = arith.truncf %112 : vector<32x32xf32> to vector<32x32xbf16>
    %c112 = arith.constant 112 : index
    %c0_38 = arith.constant 0 : index
    %114 = vector.load %arg4[%c112, %c0_38] : memref<400x128xbf16, #tpu.memory_space<vmem>>, vector<32x96xbf16>
    %cst_39 = arith.constant dense<0.000000e+00> : vector<32x96xf32>
    %115 = tpu.matmul %113, %114, %cst_39 {dimension_numbers = #tpu.dot_dimension_numbers<[1], [0], [0], [1], [0, 0, 1, 1], [], []>} : vector<32x32xbf16>, vector<32x96xbf16>, vector<32x96xf32> -> vector<32x96xf32>
    %c9 = arith.constant 9 : index
    %c0_40 = arith.constant 0 : index
    %116 = vector.load %arg5[%c9, %c0_40] : memref<32x128xf32, #tpu.memory_space<vmem>>, vector<1x96xf32>
    %117 = vector.broadcast %116 : vector<1x96xf32> to vector<32x96xf32>
    %118 = arith.addf %115, %117 : vector<32x96xf32>
    %119 = arith.mulf %118, %118 : vector<32x96xf32>
    %120 = arith.mulf %118, %119 : vector<32x96xf32>
    %cst_41 = arith.constant 4.471500e-02 : f32
    %121 = vector.broadcast %cst_41 : f32 to vector<32x96xf32>
    %122 = arith.mulf %121, %120 : vector<32x96xf32>
    %123 = arith.addf %118, %122 : vector<32x96xf32>
    %cst_42 = arith.constant 0.797884583 : f32
    %124 = vector.broadcast %cst_42 : f32 to vector<32x96xf32>
    %125 = arith.mulf %124, %123 : vector<32x96xf32>
    %126 = math.tanh %125 : vector<32x96xf32>
    %cst_43 = arith.constant 1.000000e+00 : f32
    %127 = vector.broadcast %cst_43 : f32 to vector<32x96xf32>
    %128 = arith.addf %127, %126 : vector<32x96xf32>
    %cst_44 = arith.constant 5.000000e-01 : f32
    %129 = vector.broadcast %cst_44 : f32 to vector<32x96xf32>
    %130 = arith.mulf %129, %128 : vector<32x96xf32>
    %131 = arith.mulf %118, %130 : vector<32x96xf32>
    %132 = arith.truncf %131 : vector<32x96xf32> to vector<32x96xbf16>
    %c144 = arith.constant 144 : index
    %c0_45 = arith.constant 0 : index
    %133 = vector.load %arg4[%c144, %c0_45] : memref<400x128xbf16, #tpu.memory_space<vmem>>, vector<96x32xbf16>
    %cst_46 = arith.constant dense<0.000000e+00> : vector<32x32xf32>
    %134 = tpu.matmul %132, %133, %cst_46 {dimension_numbers = #tpu.dot_dimension_numbers<[1], [0], [0], [1], [0, 0, 1, 1], [], []>} : vector<32x96xbf16>, vector<96x32xbf16>, vector<32x32xf32> -> vector<32x32xf32>
    %c10 = arith.constant 10 : index
    %c0_47 = arith.constant 0 : index
    %135 = vector.load %arg5[%c10, %c0_47] : memref<32x128xf32, #tpu.memory_space<vmem>>, vector<1x32xf32>
    %136 = vector.broadcast %135 : vector<1x32xf32> to vector<32x32xf32>
    %137 = arith.addf %134, %136 : vector<32x32xf32>
    %c11 = arith.constant 11 : index
    %c0_48 = arith.constant 0 : index
    %138 = vector.load %arg5[%c11, %c0_48] : memref<32x128xf32, #tpu.memory_space<vmem>>, vector<1x32xf32>
    %139 = vector.broadcast %138 : vector<1x32xf32> to vector<32x32xf32>
    %140 = arith.mulf %137, %139 : vector<32x32xf32>
    %141 = arith.addf %50, %140 : vector<32x32xf32>
    %142 = arith.addf %141, %1 : vector<32x32xf32>
    %cst_49 = arith.constant dense<0.000000e+00> : vector<224x32xf32>
    %143 = tpu.matmul %2, %142, %cst_49 {dimension_numbers = #tpu.dot_dimension_numbers<[1], [0], [0], [1], [0, 0, 1, 1], [], []>} : vector<224x32xf32>, vector<32x32xf32>, vector<224x32xf32> -> vector<224x32xf32>
    %cst_50 = arith.constant 0.000000e+00 : f32
    %144 = vector.broadcast %cst_50 : f32 to vector<32x32xf32>
    %c19 = arith.constant 19 : index
    %c0_51 = arith.constant 0 : index
    %145 = vector.load %arg5[%c19, %c0_51] : memref<32x128xf32, #tpu.memory_space<vmem>>, vector<1x32xf32>
    %146 = vector.broadcast %145 : vector<1x32xf32> to vector<32x32xf32>
    %147 = arith.addf %144, %146 : vector<32x32xf32>
    %148 = vector.extract_strided_slice %143 {offsets = [0, 0], sizes = [32, 32], strides = [1, 1]} : vector<224x32xf32> to vector<32x32xf32>
    %c25 = arith.constant 25 : index
    %c0_52 = arith.constant 0 : index
    %149 = vector.load %arg5[%c25, %c0_52] : memref<32x128xf32, #tpu.memory_space<vmem>>, vector<1x32xf32>
    %150 = vector.broadcast %149 : vector<1x32xf32> to vector<32x32xf32>
    %151 = arith.mulf %148, %150 : vector<32x32xf32>
    %152 = arith.addf %147, %151 : vector<32x32xf32>
    %153 = vector.extract_strided_slice %143 {offsets = [32, 0], sizes = [32, 32], strides = [1, 1]} : vector<224x32xf32> to vector<32x32xf32>
    %c26 = arith.constant 26 : index
    %c0_53 = arith.constant 0 : index
    %154 = vector.load %arg5[%c26, %c0_53] : memref<32x128xf32, #tpu.memory_space<vmem>>, vector<1x32xf32>
    %155 = vector.broadcast %154 : vector<1x32xf32> to vector<32x32xf32>
    %156 = arith.mulf %153, %155 : vector<32x32xf32>
    %157 = arith.addf %152, %156 : vector<32x32xf32>
    %158 = vector.extract_strided_slice %143 {offsets = [64, 0], sizes = [32, 32], strides = [1, 1]} : vector<224x32xf32> to vector<32x32xf32>
    %c27 = arith.constant 27 : index
    %c0_54 = arith.constant 0 : index
    %159 = vector.load %arg5[%c27, %c0_54] : memref<32x128xf32, #tpu.memory_space<vmem>>, vector<1x32xf32>
    %160 = vector.broadcast %159 : vector<1x32xf32> to vector<32x32xf32>
    %161 = arith.mulf %158, %160 : vector<32x32xf32>
    %162 = arith.addf %157, %161 : vector<32x32xf32>
    %163 = vector.extract_strided_slice %143 {offsets = [96, 0], sizes = [32, 32], strides = [1, 1]} : vector<224x32xf32> to vector<32x32xf32>
    %c28 = arith.constant 28 : index
    %c0_55 = arith.constant 0 : index
    %164 = vector.load %arg5[%c28, %c0_55] : memref<32x128xf32, #tpu.memory_space<vmem>>, vector<1x32xf32>
    %165 = vector.broadcast %164 : vector<1x32xf32> to vector<32x32xf32>
    %166 = arith.mulf %163, %165 : vector<32x32xf32>
    %167 = arith.addf %162, %166 : vector<32x32xf32>
    %168 = vector.extract_strided_slice %143 {offsets = [128, 0], sizes = [32, 32], strides = [1, 1]} : vector<224x32xf32> to vector<32x32xf32>
    %c29 = arith.constant 29 : index
    %c0_56 = arith.constant 0 : index
    %169 = vector.load %arg5[%c29, %c0_56] : memref<32x128xf32, #tpu.memory_space<vmem>>, vector<1x32xf32>
    %170 = vector.broadcast %169 : vector<1x32xf32> to vector<32x32xf32>
    %171 = arith.mulf %168, %170 : vector<32x32xf32>
    %172 = arith.addf %167, %171 : vector<32x32xf32>
    %173 = vector.extract_strided_slice %143 {offsets = [160, 0], sizes = [32, 32], strides = [1, 1]} : vector<224x32xf32> to vector<32x32xf32>
    %c30 = arith.constant 30 : index
    %c0_57 = arith.constant 0 : index
    %174 = vector.load %arg5[%c30, %c0_57] : memref<32x128xf32, #tpu.memory_space<vmem>>, vector<1x32xf32>
    %175 = vector.broadcast %174 : vector<1x32xf32> to vector<32x32xf32>
    %176 = arith.mulf %173, %175 : vector<32x32xf32>
    %177 = arith.addf %172, %176 : vector<32x32xf32>
    %178 = vector.extract_strided_slice %143 {offsets = [192, 0], sizes = [32, 32], strides = [1, 1]} : vector<224x32xf32> to vector<32x32xf32>
    %c31 = arith.constant 31 : index
    %c0_58 = arith.constant 0 : index
    %179 = vector.load %arg5[%c31, %c0_58] : memref<32x128xf32, #tpu.memory_space<vmem>>, vector<1x32xf32>
    %180 = vector.broadcast %179 : vector<1x32xf32> to vector<32x32xf32>
    %181 = arith.mulf %178, %180 : vector<32x32xf32>
    %182 = arith.addf %177, %181 : vector<32x32xf32>
    %cst_59 = arith.constant dense<0.000000e+00> : vector<32xf32>
    %183 = vector.multi_reduction <add>, %182, %cst_59 [1] : vector<32x32xf32> to vector<32xf32>
    %184 = vector.shape_cast %183 : vector<32xf32> to vector<32x1xf32>
    %cst_60 = arith.constant 3.200000e+01 : f32
    %185 = vector.broadcast %cst_60 : f32 to vector<32x1xf32>
    %186 = arith.divf %184, %185 : vector<32x1xf32>
    %187 = vector.broadcast %186 : vector<32x1xf32> to vector<32x32xf32>
    %188 = arith.subf %182, %187 : vector<32x32xf32>
    %189 = arith.mulf %188, %188 : vector<32x32xf32>
    %cst_61 = arith.constant dense<0.000000e+00> : vector<32xf32>
    %190 = vector.multi_reduction <add>, %189, %cst_61 [1] : vector<32x32xf32> to vector<32xf32>
    %191 = vector.shape_cast %190 : vector<32xf32> to vector<32x1xf32>
    %cst_62 = arith.constant 3.200000e+01 : f32
    %192 = vector.broadcast %cst_62 : f32 to vector<32x1xf32>
    %193 = arith.divf %191, %192 : vector<32x1xf32>
    %cst_63 = arith.constant 9.99999997E-7 : f32
    %194 = vector.broadcast %cst_63 : f32 to vector<32x1xf32>
    %195 = arith.addf %193, %194 : vector<32x1xf32>
    %196 = math.rsqrt %195 : vector<32x1xf32>
    %197 = vector.broadcast %196 : vector<32x1xf32> to vector<32x32xf32>
    %198 = arith.mulf %188, %197 : vector<32x32xf32>
    %c20 = arith.constant 20 : index
    %c0_64 = arith.constant 0 : index
    %199 = vector.load %arg5[%c20, %c0_64] : memref<32x128xf32, #tpu.memory_space<vmem>>, vector<1x32xf32>
    %200 = vector.broadcast %199 : vector<1x32xf32> to vector<32x32xf32>
    %201 = arith.mulf %198, %200 : vector<32x32xf32>
    %c21 = arith.constant 21 : index
    %c0_65 = arith.constant 0 : index
    %202 = vector.load %arg5[%c21, %c0_65] : memref<32x128xf32, #tpu.memory_space<vmem>>, vector<1x32xf32>
    %203 = vector.broadcast %202 : vector<1x32xf32> to vector<32x32xf32>
    %204 = arith.addf %201, %203 : vector<32x32xf32>
    %205 = arith.truncf %204 : vector<32x32xf32> to vector<32x32xbf16>
    %c240 = arith.constant 240 : index
    %c0_66 = arith.constant 0 : index
    %206 = vector.load %arg4[%c240, %c0_66] : memref<400x128xbf16, #tpu.memory_space<vmem>>, vector<32x96xbf16>
    %cst_67 = arith.constant dense<0.000000e+00> : vector<32x96xf32>
    %207 = tpu.matmul %205, %206, %cst_67 {dimension_numbers = #tpu.dot_dimension_numbers<[1], [0], [0], [1], [0, 0, 1, 1], [], []>} : vector<32x32xbf16>, vector<32x96xbf16>, vector<32x96xf32> -> vector<32x96xf32>
    %c22 = arith.constant 22 : index
    %c0_68 = arith.constant 0 : index
    %208 = vector.load %arg5[%c22, %c0_68] : memref<32x128xf32, #tpu.memory_space<vmem>>, vector<1x96xf32>
    %209 = vector.broadcast %208 : vector<1x96xf32> to vector<32x96xf32>
    %210 = arith.addf %207, %209 : vector<32x96xf32>
    %211 = arith.mulf %210, %210 : vector<32x96xf32>
    %212 = arith.mulf %210, %211 : vector<32x96xf32>
    %cst_69 = arith.constant 4.471500e-02 : f32
    %213 = vector.broadcast %cst_69 : f32 to vector<32x96xf32>
    %214 = arith.mulf %213, %212 : vector<32x96xf32>
    %215 = arith.addf %210, %214 : vector<32x96xf32>
    %cst_70 = arith.constant 0.797884583 : f32
    %216 = vector.broadcast %cst_70 : f32 to vector<32x96xf32>
    %217 = arith.mulf %216, %215 : vector<32x96xf32>
    %218 = math.tanh %217 : vector<32x96xf32>
    %cst_71 = arith.constant 1.000000e+00 : f32
    %219 = vector.broadcast %cst_71 : f32 to vector<32x96xf32>
    %220 = arith.addf %219, %218 : vector<32x96xf32>
    %cst_72 = arith.constant 5.000000e-01 : f32
    %221 = vector.broadcast %cst_72 : f32 to vector<32x96xf32>
    %222 = arith.mulf %221, %220 : vector<32x96xf32>
    %223 = arith.mulf %210, %222 : vector<32x96xf32>
    %224 = arith.truncf %223 : vector<32x96xf32> to vector<32x96xbf16>
    %c272 = arith.constant 272 : index
    %c0_73 = arith.constant 0 : index
    %225 = vector.load %arg4[%c272, %c0_73] : memref<400x128xbf16, #tpu.memory_space<vmem>>, vector<96x32xbf16>
    %cst_74 = arith.constant dense<0.000000e+00> : vector<32x32xf32>
    %226 = tpu.matmul %224, %225, %cst_74 {dimension_numbers = #tpu.dot_dimension_numbers<[1], [0], [0], [1], [0, 0, 1, 1], [], []>} : vector<32x96xbf16>, vector<96x32xbf16>, vector<32x32xf32> -> vector<32x32xf32>
    %c23 = arith.constant 23 : index
    %c0_75 = arith.constant 0 : index
    %227 = vector.load %arg5[%c23, %c0_75] : memref<32x128xf32, #tpu.memory_space<vmem>>, vector<1x32xf32>
    %228 = vector.broadcast %227 : vector<1x32xf32> to vector<32x32xf32>
    %229 = arith.addf %226, %228 : vector<32x32xf32>
    %c24 = arith.constant 24 : index
    %c0_76 = arith.constant 0 : index
    %230 = vector.load %arg5[%c24, %c0_76] : memref<32x128xf32, #tpu.memory_space<vmem>>, vector<1x32xf32>
    %231 = vector.broadcast %230 : vector<1x32xf32> to vector<32x32xf32>
    %232 = arith.mulf %229, %231 : vector<32x32xf32>
    %233 = arith.addf %142, %232 : vector<32x32xf32>
    %cst_77 = arith.constant dense<0.000000e+00> : vector<32xf32>
    %234 = vector.multi_reduction <add>, %233, %cst_77 [1] : vector<32x32xf32> to vector<32xf32>
    %235 = vector.shape_cast %234 : vector<32xf32> to vector<32x1xf32>
    %cst_78 = arith.constant 3.200000e+01 : f32
    %236 = vector.broadcast %cst_78 : f32 to vector<32x1xf32>
    %237 = arith.divf %235, %236 : vector<32x1xf32>
    %238 = vector.broadcast %237 : vector<32x1xf32> to vector<32x32xf32>
    %239 = arith.subf %233, %238 : vector<32x32xf32>
    %240 = arith.mulf %239, %239 : vector<32x32xf32>
    %cst_79 = arith.constant dense<0.000000e+00> : vector<32xf32>
    %241 = vector.multi_reduction <add>, %240, %cst_79 [1] : vector<32x32xf32> to vector<32xf32>
    %242 = vector.shape_cast %241 : vector<32xf32> to vector<32x1xf32>
    %cst_80 = arith.constant 3.200000e+01 : f32
    %243 = vector.broadcast %cst_80 : f32 to vector<32x1xf32>
    %244 = arith.divf %242, %243 : vector<32x1xf32>
    %cst_81 = arith.constant 9.99999997E-7 : f32
    %245 = vector.broadcast %cst_81 : f32 to vector<32x1xf32>
    %246 = arith.addf %244, %245 : vector<32x1xf32>
    %247 = math.rsqrt %246 : vector<32x1xf32>
    %248 = vector.broadcast %247 : vector<32x1xf32> to vector<32x32xf32>
    %249 = arith.mulf %239, %248 : vector<32x32xf32>
    %c3 = arith.constant 3 : index
    %c0_82 = arith.constant 0 : index
    %250 = vector.load %arg5[%c3, %c0_82] : memref<32x128xf32, #tpu.memory_space<vmem>>, vector<1x32xf32>
    %251 = vector.broadcast %250 : vector<1x32xf32> to vector<32x32xf32>
    %252 = arith.mulf %249, %251 : vector<32x32xf32>
    %c4 = arith.constant 4 : index
    %c0_83 = arith.constant 0 : index
    %253 = vector.load %arg5[%c4, %c0_83] : memref<32x128xf32, #tpu.memory_space<vmem>>, vector<1x32xf32>
    %254 = vector.broadcast %253 : vector<1x32xf32> to vector<32x32xf32>
    %255 = arith.addf %252, %254 : vector<32x32xf32>
    %256 = arith.truncf %255 : vector<32x32xf32> to vector<32x32xbf16>
    %c368 = arith.constant 368 : index
    %c0_84 = arith.constant 0 : index
    %257 = vector.load %arg4[%c368, %c0_84] : memref<400x128xbf16, #tpu.memory_space<vmem>>, vector<32x16xbf16>
    %cst_85 = arith.constant dense<0.000000e+00> : vector<32x16xf32>
    %258 = tpu.matmul %256, %257, %cst_85 {dimension_numbers = #tpu.dot_dimension_numbers<[1], [0], [0], [1], [0, 0, 1, 1], [], []>} : vector<32x32xbf16>, vector<32x16xbf16>, vector<32x16xf32> -> vector<32x16xf32>
    %c5 = arith.constant 5 : index
    %c0_86 = arith.constant 0 : index
    %259 = vector.load %arg5[%c5, %c0_86] : memref<32x128xf32, #tpu.memory_space<vmem>>, vector<1x16xf32>
    %260 = vector.broadcast %259 : vector<1x16xf32> to vector<32x16xf32>
    %261 = arith.addf %258, %260 : vector<32x16xf32>
    %262 = vector.extract_strided_slice %0 {offsets = [0, 48], sizes = [32, 8], strides = [1, 1]} : vector<32x112xf32> to vector<32x8xf32>
    %263 = vector.extract_strided_slice %261 {offsets = [0, 0], sizes = [32, 8], strides = [1, 1]} : vector<32x16xf32> to vector<32x8xf32>
    %264 = arith.addf %262, %263 : vector<32x8xf32>
    %265 = vector.extract_strided_slice %261 {offsets = [0, 8], sizes = [32, 8], strides = [1, 1]} : vector<32x16xf32> to vector<32x8xf32>
    %266 = math.exp %264 : vector<32x8xf32>
    %267 = math.cos %265 : vector<32x8xf32>
    %268 = arith.mulf %266, %267 : vector<32x8xf32>
    %269 = math.sin %265 : vector<32x8xf32>
    %270 = arith.mulf %266, %269 : vector<32x8xf32>
    %271 = tpu.concatenate %264, %265, %268, %270 in 1 : vector<32x8xf32>, vector<32x8xf32>, vector<32x8xf32>, vector<32x8xf32> -> vector<32x32xf32>
    %c0_87 = arith.constant 0 : index
    %c0_88 = arith.constant 0 : index
    %272 = vector.load %arg6[%c0_87, %c0_88] : memref<32x32xf32, #tpu.memory_space<vmem>>, vector<32x32xf32>
    tpu.vector_store %arg6[%c0_87, %c0_88], %271 {strides = array<i32>} : memref<32x32xf32, #tpu.memory_space<vmem>>, vector<32x32xf32>,
    return
  }
  func.func @transform_0(%arg0: i32) -> (i32, i32) {
    %c0_i32 = arith.constant 0 : i32
    %c0_i32_0 = arith.constant 0 : i32
    %c0_i32_1 = arith.constant 0 : i32
    return %c0_i32, %c0_i32_0 : i32, i32
  }
  func.func @transform_1(%arg0: i32) -> (i32, i32) {
    %c0_i32 = arith.constant 0 : i32
    %c0_i32_0 = arith.constant 0 : i32
    %c0_i32_1 = arith.constant 0 : i32
    return %c0_i32, %c0_i32_0 : i32, i32
  }
  func.func @transform_2(%arg0: i32) -> (i32, i32) {
    %c0_i32 = arith.constant 0 : i32
    %c0_i32_0 = arith.constant 0 : i32
    %c0_i32_1 = arith.constant 0 : i32
    return %c0_i32, %c0_i32_0 : i32, i32
  }
  func.func @transform_3(%arg0: i32) -> (i32, i32) {
    %c0_i32 = arith.constant 0 : i32
    %c0_i32_0 = arith.constant 0 : i32
    %c0_i32_1 = arith.constant 0 : i32
    return %c0_i32, %c0_i32_0 : i32, i32
  }
  func.func @transform_4(%arg0: i32) -> (i32, i32) {
    %c0_i32 = arith.constant 0 : i32
    %c0_i32_0 = arith.constant 0 : i32
    %c0_i32_1 = arith.constant 0 : i32
    return %c0_i32, %c0_i32_0 : i32, i32
  }
  func.func @transform_5(%arg0: i32) -> (i32, i32) {
    %c0_i32 = arith.constant 0 : i32
    %c0_i32_0 = arith.constant 0 : i32
    %c0_i32_1 = arith.constant 0 : i32
    return %c0_i32, %c0_i32_0 : i32, i32
  }
}

</mosaic_0001>

<bundles_post_ra>
// kernel: vocos_bwe_forward.1
= control target key start
LH: loop header
LB: loop body
LE: loop exit
PB: predicated region body
PF: predicated region fallthrough
CT: control target
= control target key end

     0   :  { %vm120_vm0 = vcmask 916480   ;;  %s3348_s17 = smov 112   ;;  %vm176_vm1 = vcmask 130048   ;;  %vm340_vm2 = vcmask 261120   ;;  %vm967_vm3 = vcmask 785408   ;;  %s3349_s19 = smov 48   ;;  %s4391_s3 = inlined_call_operand.vmem [shape: bf16[400,128], index: 3, kind: input, shape index: {}]   ;;  %s4392_s0 = inlined_call_operand.vmem [shape: f32[32,112], index: 0, kind: input, shape index: {}]   ;;  %s4393_s4 = inlined_call_operand.vmem [shape: f32[32,128], index: 4, kind: input, shape index: {}]   ;;  %s4394_s2 = inlined_call_operand.vmem [shape: f32[224,32], index: 2, kind: input, shape index: {}]   ;;  %s4395_s1 = inlined_call_operand.vmem [shape: f32[32,32], index: 1, kind: input, shape index: {}]   ;;  %s4396_s5 = inlined_call_operand.vmem [shape: f32[32,32], index: 5, kind: output, shape index: {}]  }
   0x1   :  { %v3239_v0 = vld [vmem:[%s4391_s3] sm:$0xff]   ;;  %v3240_v1 = vld [vmem:[%s4391_s3 + $0x8] sm:$0xff]   ;;  %v3241_v2 = vld [vmem:[%s4391_s3 + $0x10] sm:$0xff]   ;;  %s3357_s22 = smov 80   ;;  %s3358_s29 = smov 96  }
   0x2   :  { %3021 = vmatprep.subr.bf16.mxu0 %v3239_v0  ;;  %v21_v3 = vld [vmem:[%s4392_s0] sm:$0xff]  ;;  %v22_v4 = vld [vmem:[%s4392_s0 + $0x8] sm:$0xff]  ;;  %v3242_v5 = vld [vmem:[%s4391_s3 + $0x18] sm:$0xff]  }
   0x3   :  { %3022 = vmatpush3.bf16.msra.mxu0 %v3239_v0  ;;  %v57_v6 = vpack.c.bf16 %v22_v4, %v21_v3  ;;  %v3243_v7 = vld [vmem:[%s4391_s3 + $0x20] sm:$0xff]   ;;  %v3244_v8 = vld [vmem:[%s4391_s3 + $0x28] sm:$0xff]   ;;  %v3245_v9 = vld [vmem:[%s4391_s3 + $0x30] sm:$0xff]  }
   0x4   :  { %3023 = vmatprep.subr.bf16.mxu0 %v3240_v1  ;;  %v23_v10 = vld [vmem:[%s4392_s0 + $0x10] sm:$0xff]  ;;  %v24_v11 = vld [vmem:[%s4392_s0 + $0x18] sm:$0xff]  ;;  %v2763_v13 = vld [vmem:[%s4393_s4] ss:$0 sm:$0xff] }
   0x5   :  { %3035 = vmatprep.mubr.msk.bf16.mxu0 %vm120_vm0, %v57_v6  ;;  %v58_v12 = vpack.c.bf16 %v24_v11, %v23_v10 }
   0x7   :  { %3024 = vmatpush3.bf16.msra.mxu0 %v3240_v1 }
   0x8   :  { %3025 = vmatprep.subr.bf16.mxu0 %v3241_v2 }
   0xb   :  { %3026 = vmatpush3.bf16.msra.mxu0 %v3241_v2 }
   0xc   :  { %3027 = vmatprep.subr.bf16.mxu0 %v3242_v5 }
   0xf   :  { %3028 = vmatpush3.bf16.msra.mxu0 %v3242_v5 }
  0x10   :  { %3029 = vmatprep.subr.bf16.mxu0 %v3243_v7 }
  0x13   :  { %3030 = vmatpush3.bf16.msra.mxu0 %v3243_v7 }
  0x14   :  { %3031 = vmatprep.subr.bf16.mxu0 %v3244_v8 }
  0x17   :  { %3032 = vmatpush3.bf16.msra.mxu0 %v3244_v8 }
  0x18   :  { %3033 = vmatprep.subr.bf16.mxu0 %v3245_v9 }
  0x1b   :  { %3034 = vmatpush3.bf16.msra.mxu0 %v3245_v9 }
  0x1e   :  { %3036 = vmatmul.mubr.msk.bf16.vlgmr.msra.gmra.mrb[0].mxu0 %vm120_vm0, %v58_v12 }
  0xf1   :  { %v3037_v14 = vpop.f32.mrb[0].mxu0 }
  0xf2   :  { %v3428_v15 = vadd.f32 %v3037_v14, %v2763_v13  ;;  %v161_v16 = vpop.f32.mrb[1].mxu0  ;;  %v3493_v14 = vld [vmem:[%s4394_s2] sm:$0xff] }
  0xf3   :  { %v162_v17 = vadd.f32 %v2763_v13, %v161_v16  ;;  %v3038_v18 = vpop.f32.mrb[2].mxu0  ;;  %3047 = vmatprep.mubr.msk.f32.mxu1 %vm340_vm2, %v3493_v14 }
  0xf4   :  { %238 = vrot.lane.b32.xlu1 %v3428_v15, %s3348_s17  ;;  %v164_v19 = vpop.f32.mrb[3].mxu0  ;;  %v173_v20 = vadd.f32 %v3038_v18, %v2763_v13  ;;  %v183_v32 = vsel %vm176_vm1, %v3428_v15, 0.0 }
  0xf5   :  { %234 = vrot.lane.b32.xlu0 %v162_v17, %s3348_s17  ;;  %v165_v21 = vadd.f32 %v2763_v13, %v164_v19  ;;  %v177_v30 = vsel %vm176_vm1, %v162_v17, 0.0 }
  0xf6   :  { %v186_v33 = vsel %vm176_vm1, %v173_v20, 0.0 }
  0xf7   :  { %v180_v31 = vsel %vm176_vm1, %v165_v21, 0.0 }
  0xf8   :  { %240 = vrot.lane.b32.xlu1 %v173_v20, %s3348_s17 }
  0xf9   :  { %236 = vrot.lane.b32.xlu0 %v165_v21, %s3348_s17 }
 0x166   :  { %v239_v22 = vpop.permute.xlu1 %238 }
 0x167   :  { %v235_v23 = vpop.permute.xlu0 %234  ;;  %v252_v26 = vsel %vm176_vm1, %v239_v22, 0.0 }
 0x168   :  { %v246_v24 = vsel %vm176_vm1, %v235_v23, 0.0 }
 0x169   :  { %247 = vadd.xlane.f32.xlu0 %v246_v24 }
 0x16a   :  { %v241_v28 = vpop.permute.xlu1 %240 }
 0x16b   :  { %v237_v25 = vpop.permute.xlu0 %236  ;;  %v255_v29 = vsel %vm176_vm1, %v241_v28, 0.0 }
 0x16c   :  { %v249_v27 = vsel %vm176_vm1, %v237_v25, 0.0 }
 0x16d   :  { %253 = vadd.xlane.f32.xlu0 %v252_v26  ;;  %250 = vadd.xlane.f32.xlu1 %v249_v27 }
 0x171   :  { %256 = vadd.xlane.f32.xlu0 %v255_v29  ;;  %178 = vadd.xlane.f32.xlu1 %v177_v30 }
 0x175   :  { %181 = vadd.xlane.f32.xlu0 %v180_v31  ;;  %184 = vadd.xlane.f32.xlu1 %v183_v32 }
 0x179   :  { %187 = vadd.xlane.f32.xlu0 %v186_v33 }
 0x1f6   :  { %v248_v34 = vpop.xlane.xlu0 %247 }
 0x1f7   :  { %v258_v35 = vmul.f32 0.0625, %v248_v34 }
 0x1f9   :  { %v3444_v36 = vsub.f32 %v162_v17, %v258_v35 }
 0x1fa   :  { %v251_v37 = vpop.xlane.xlu1 %250  ;;  %v254_v38 = vpop.xlane.xlu0 %253 }
 0x1fb   :  { %v259_v39 = vmul.f32 0.0625, %v251_v37  ;;  %v260_v40 = vmul.f32 0.0625, %v254_v38  ;;  %v266_v41 = vmul.f32 %v3444_v36, %v3444_v36 }
 0x1fd   :  { %v3448_v42 = vsub.f32 %v165_v21, %v259_v39  ;;  %v3451_v43 = vsub.f32 %v3428_v15, %v260_v40  ;;  %274 = vrot.lane.b32.xlu1 %v266_v41, %s3348_s17 }
 0x1fe   :  { %v257_v44 = vpop.xlane.xlu0 %256  ;;  %v179_v51 = vpop.xlane.xlu1 %178 }
 0x1ff   :  { %v261_v45 = vmul.f32 0.0625, %v257_v44  ;;  %v267_v46 = vmul.f32 %v3448_v42, %v3448_v42  ;;  %v268_v47 = vmul.f32 %v3451_v43, %v3451_v43  ;;  %v190_v52 = vmul.f32 0.0625, %v179_v51 }
 0x201   :  { %v3458_v48 = vsub.f32 %v173_v20, %v261_v45  ;;  %276 = vrot.lane.b32.xlu0 %v267_v46, %s3348_s17  ;;  %278 = vrot.lane.b32.xlu1 %v268_v47, %s3348_s17  ;;  %v3465_v54 = vsub.f32 %v162_v17, %v190_v52  ;;  %v2773_v46 = vld [vmem:[%s4393_s4 + $0x1] ss:$0 sm:$0xff] }
 0x202   :  { %v182_v50 = vpop.xlane.xlu0 %181  ;;  %v185_v59 = vpop.xlane.xlu1 %184 }
 0x203   :  { %v269_v49 = vmul.f32 %v3458_v48, %v3458_v48  ;;  %v198_v57 = vmul.f32 %v3465_v54, %v3465_v54  ;;  %v191_v58 = vmul.f32 0.0625, %v182_v50  ;;  %v192_v63 = vmul.f32 0.0625, %v185_v59 }
 0x205   :  { %280 = vrot.lane.b32.xlu1 %v269_v49, %s3348_s17  ;;  %v202_v60 = vsel %vm176_vm1, %v198_v57, 0.0  ;;  %v3474_v62 = vsub.f32 %v165_v21, %v191_v58  ;;  %v3478_v1 = vsub.f32 %v3428_v15, %v192_v63 }
 0x206   :  { %v188_v53 = vpop.xlane.xlu0 %187 }
 0x207   :  { %v193_v55 = vmul.f32 0.0625, %v188_v53  ;;  %v199_v2 = vmul.f32 %v3474_v62, %v3474_v62  ;;  %v200_v4 = vmul.f32 %v3478_v1, %v3478_v1 }
 0x209   :  { %v3467_v56 = vsub.f32 %v173_v20, %v193_v55  ;;  %v205_v3 = vsel %vm176_vm1, %v199_v2, 0.0  ;;  %v208_v5 = vsel %vm176_vm1, %v200_v4, 0.0 }
 0x20b   :  { %v201_v61 = vmul.f32 %v3467_v56, %v3467_v56 }
 0x20d   :  { %v211_v0 = vsel %vm176_vm1, %v201_v61, 0.0 }
 0x220   :  { %203 = vadd.xlane.f32.xlu0 %v202_v60 }
 0x224   :  { %212 = vadd.xlane.f32.xlu0 %v211_v0 }
 0x229   :  { %206 = vadd.xlane.f32.xlu1 %v205_v3  ;;  %v3517_v3 = vld [vmem:[%s4395_s1] sm:$0xff] }
 0x22d   :  { %209 = vadd.xlane.f32.xlu1 %v208_v5 }
 0x26f   :  { %v275_v6 = vpop.permute.xlu1 %274 }
 0x270   :  { %v286_v7 = vsel %vm176_vm1, %v275_v6, 0.0 }
 0x271   :  { %287 = vadd.xlane.f32.xlu0 %v286_v7 }
 0x273   :  { %v277_v8 = vpop.permute.xlu0 %276  ;;  %v279_v9 = vpop.permute.xlu1 %278 }
 0x274   :  { %v289_v10 = vsel %vm176_vm1, %v277_v8, 0.0  ;;  %v292_v11 = vsel %vm176_vm1, %v279_v9, 0.0  ;;  %v3534_v8 = vld [vmem:[%s4395_s1 + $0x10] sm:$0xff]  ;;  %v3539_v9 = vld [vmem:[%s4395_s1 + $0x18] sm:$0xff] }
 0x275   :  { %290 = vadd.xlane.f32.xlu0 %v289_v10  ;;  %293 = vadd.xlane.f32.xlu1 %v292_v11 }
 0x277   :  { %v281_v12 = vpop.permute.xlu1 %280 }
 0x278   :  { %v295_v13 = vsel %vm176_vm1, %v281_v12, 0.0 }
 0x279   :  { %296 = vadd.xlane.f32.xlu0 %v295_v13 }
 0x2ad   :  { %v204_v15 = vpop.xlane.xlu0 %203 }
 0x2ae   :  { %v214_v17 = vmul.f32 0.0625, %v204_v15 }
 0x2b0   :  { %v218_v20 = vadd.f32 1e-06, %v214_v17  ;;  %v3559_v17 = vld [vmem:[%s4394_s2 + $0x10] sm:$0xff] }
 0x2b1   :  { %v213_v18 = vpop.xlane.xlu0 %212 }
 0x2b2   :  { %3264 = vrsqrt.f32 %v218_v20  ;;  %v217_v25 = vmul.f32 0.0625, %v213_v18  ;;  %v3568_v18 = vld [vmem:[%s4394_s2 + $0x18] sm:$0xff]  ;;  %v3582_v20 = vld [vmem:[%s4394_s2 + $0x28] sm:$0xff] }
 0x2b4   :  { %v221_v33 = vadd.f32 1e-06, %v217_v25  ;;  %v3615_v25 = vld [vmem:[%s4394_s2 + $0x50] sm:$0xff] }
 0x2b6   :  { %v207_v16 = vpop.xlane.xlu1 %206 }
 0x2b7   :  { %v215_v21 = vmul.f32 0.0625, %v207_v16  ;;  %v3554_v16 = vld [vmem:[%s4394_s2 + $0x8] sm:$0xff] }
 0x2b9   :  { %v219_v26 = vadd.f32 1e-06, %v215_v21  ;;  %v3587_v21 = vld [vmem:[%s4394_s2 + $0x30] sm:$0xff] }
 0x2ba   :  { %v210_v19 = vpop.xlane.xlu1 %209 }
 0x2bb   :  { %v216_v22 = vmul.f32 0.0625, %v210_v19  ;;  %v3573_v19 = vld [vmem:[%s4394_s2 + $0x20] sm:$0xff] }
 0x2bc   :  { %v3265_v40 = vpop.eup %3264 }
 0x2bd   :  { %v220_v28 = vadd.f32 1e-06, %v216_v22  ;;  %v226_v44 = vmul.f32 %v3265_v40, %v3465_v54  ;;  %v2774_v54 = vld [vmem:[%s4393_s4 + $0x2] ss:$0 sm:$0xff]  ;;  %v3596_v22 = vld [vmem:[%s4394_s2 + $0x38] sm:$0xff] }
 0x2be   :  { %v3713_v40 = vld [vmem:[%s4394_s2 + $0xc0] sm:$0xff] }
 0x2fe   :  { %v288_v23 = vpop.xlane.xlu0 %287 }
 0x2ff   :  { %v298_v24 = vmul.f32 0.0625, %v288_v23  ;;  %v3601_v23 = vld [vmem:[%s4394_s2 + $0x40] sm:$0xff] }
 0x301   :  { %v302_v27 = vadd.f32 1e-06, %v298_v24  ;;  %v3610_v24 = vld [vmem:[%s4394_s2 + $0x48] sm:$0xff] }
 0x302   :  { %v291_v29 = vpop.xlane.xlu0 %290  ;;  %v294_v30 = vpop.xlane.xlu1 %293 }
 0x303   :  { %3266 = vrsqrt.f32 %v302_v27  ;;  %v299_v31 = vmul.f32 0.0625, %v291_v29  ;;  %v300_v32 = vmul.f32 0.0625, %v294_v30  ;;  %v3629_v27 = vld [vmem:[%s4394_s2 + $0x60] sm:$0xff]  ;;  %v3643_v29 = vld [vmem:[%s4394_s2 + $0x70] sm:$0xff]  ;;  %v3652_v30 = vld [vmem:[%s4394_s2 + $0x78] sm:$0xff] }
 0x304   :  { %3268 = vrsqrt.f32 %v219_v26  ;;  %v3624_v26 = vld [vmem:[%s4394_s2 + $0x58] sm:$0xff] }
 0x305   :  { %v303_v34 = vadd.f32 1e-06, %v299_v31  ;;  %v304_v35 = vadd.f32 1e-06, %v300_v32  ;;  %3270 = vrsqrt.f32 %v220_v28  ;;  %v3638_v28 = vld [vmem:[%s4394_s2 + $0x68] sm:$0xff]  ;;  %v3657_v31 = vld [vmem:[%s4394_s2 + $0x80] sm:$0xff] }
 0x306   :  { %v297_v37 = vpop.xlane.xlu0 %296  ;;  %v3666_v32 = vld [vmem:[%s4394_s2 + $0x88] sm:$0xff] }
 0x307   :  { %3272 = vrsqrt.f32 %v303_v34  ;;  %v301_v38 = vmul.f32 0.0625, %v297_v37  ;;  %v3680_v34 = vld [vmem:[%s4394_s2 + $0x98] sm:$0xff]  ;;  %v3694_v37 = vld [vmem:[%s4394_s2 + $0xa8] sm:$0xff] }
 0x308   :  { %3274 = vrsqrt.f32 %v304_v35  ;;  %v3685_v35 = vld [vmem:[%s4394_s2 + $0xa0] sm:$0xff] }
 0x309   :  { %3276 = vrsqrt.f32 %v221_v33  ;;  %v305_v39 = vadd.f32 1e-06, %v301_v38  ;;  %v3671_v33 = vld [vmem:[%s4394_s2 + $0x90] sm:$0xff] }
 0x30a   :  { %v3699_v38 = vld [vmem:[%s4394_s2 + $0xb0] sm:$0xff] }
 0x30b   :  { %3278 = vrsqrt.f32 %v305_v39  ;;  %v3708_v39 = vld [vmem:[%s4394_s2 + $0xb8] sm:$0xff] }
 0x30d   :  { %v3267_v41 = vpop.eup %3266 }
 0x30e   :  { %v310_v45 = vmul.f32 %v3267_v41, %v3444_v36  ;;  %v3269_v47 = vpop.eup %3268  ;;  %v3722_v41 = vld [vmem:[%s4394_s2 + $0xc8] sm:$0xff] }
 0x30f   :  { %v3271_v49 = vpop.eup %3270  ;;  %v227_v55 = vmul.f32 %v3269_v47, %v3474_v62 }
 0x310   :  { %v314_v50 = vsel %vm176_vm1, %v226_v44, %v310_v45  ;;  %v228_v58 = vmul.f32 %v3271_v49, %v3478_v1  ;;  %v3727_v44 = vld [vmem:[%s4394_s2 + $0xd0] sm:$0xff]  ;;  %v3736_v45 = vld [vmem:[%s4394_s2 + $0xd8] sm:$0xff]  ;;  %v2804_v49 = vld [vmem:[%s4393_s4 + $0xc] ss:$0 sm:$0xff] }
 0x311   :  { %v3273_v51 = vpop.eup %3272  ;;  %v323_v52 = vmul.f32 %v2773_v46, %v314_v50 }
 0x312   :  { %v3275_v53 = vpop.eup %3274  ;;  %v311_v57 = vmul.f32 %v3273_v51, %v3448_v42 }
 0x313   :  { %v3277_v36 = vpop.eup %3276  ;;  %v312_v59 = vmul.f32 %v3275_v53, %v3451_v43  ;;  %v332_v0 = vadd.f32 %v2774_v54, %v323_v52  ;;  %v3522_v43 = vld [vmem:[%s4395_s1 + $0x8] sm:$0xff]  ;;  %v2803_v53 = vld [vmem:[%s4393_s4 + $0x6] ss:$0 sm:$0xff] }
 0x314   :  { %v315_v60 = vsel %vm176_vm1, %v227_v55, %v311_v57  ;;  %v229_v62 = vmul.f32 %v3277_v36, %v3467_v56  ;;  %v2805_v57 = vld [vmem:[%s4393_s4 + $0xd] ss:$0 sm:$0xff] }
 0x315   :  { %v3279_v61 = vpop.eup %3278  ;;  %v324_v63 = vmul.f32 %v2773_v46, %v315_v60  ;;  %v316_v2 = vsel %vm176_vm1, %v228_v58, %v312_v59  ;;  %v3526_v6 = vadd.f32 %v332_v0, %v3517_v3 }
 0x316   :  { %v313_v42 = vmul.f32 %v3279_v61, %v3458_v48  ;;  %v325_v1 = vmul.f32 %v2773_v46, %v316_v2 }
 0x317   :  { %v333_v4 = vadd.f32 %v2774_v54, %v324_v63 }
 0x318   :  { %v317_v5 = vsel %vm176_vm1, %v229_v62, %v313_v42  ;;  %v334_v7 = vadd.f32 %v2774_v54, %v325_v1 }
 0x319   :  { %v3529_v56 = vadd.f32 %v333_v4, %v3522_v43  ;;  %v326_v48 = vmul.f32 %v2773_v46, %v317_v5 }
 0x31a   :  { %v3544_v12 = vadd.f32 %v334_v7, %v3534_v8  ;;  %v2806_v7 = vld [vmem:[%s4393_s4 + $0xe] ss:$0 sm:$0xff] }
 0x31b   :  { %v3195_v10 = vpack.c.bf16 %v3529_v56, %v3526_v6  ;;  %v335_v11 = vadd.f32 %v2774_v54, %v326_v48 }
 0x31d   :  { %3196 = vmatprep.subr.bf16.mxu1 %v3195_v10  ;;  %v3547_v13 = vadd.f32 %v335_v11, %v3539_v9 }
 0x31e   :  { %3198 = vmatpush3.bf16.msra.mxu1 %v3195_v10 }
 0x31f   :  { %v3199_v15 = vpack.c.bf16 %v3547_v13, %v3544_v12 }
 0x321   :  { %3200 = vmatprep.subr.bf16.mxu1 %v3199_v15 }
 0x322   :  { %3202 = vmatpush3.bf16.msra.mxu1 %v3199_v15 }
 0x325   :  { %3048 = vmatmul.mubr.msk.f32.vlgmr.msra.gmra.mrb[0].mxu1 %vm340_vm2, %v3554_v16 }
 0x326   :  { %3050 = vmatprep.mubr.msk.f32.mxu1 %vm340_vm2, %v3559_v17 }
 0x329   :  { %3051 = vmatmul.mubr.msk.f32.gmra.mrb[2].mxu1 %vm340_vm2, %v3568_v18 }
 0x32a   :  { %3053 = vmatprep.mubr.msk.f32.mxu1 %vm340_vm2, %v3573_v19 }
 0x32d   :  { %3054 = vmatmul.mubr.msk.f32.gmra.mrb[4].mxu1 %vm340_vm2, %v3582_v20 }
 0x32e   :  { %3056 = vmatprep.mubr.msk.f32.mxu1 %vm340_vm2, %v3587_v21 }
 0x331   :  { %3057 = vmatmul.mubr.msk.f32.gmra.mrb[6].mxu1 %vm340_vm2, %v3596_v22 }
 0x332   :  { %3059 = vmatprep.mubr.msk.f32.mxu1 %vm340_vm2, %v3601_v23 }
 0x335   :  { %3060 = vmatmul.mubr.msk.f32.gmra.mrb[8].mxu1 %vm340_vm2, %v3610_v24 }
 0x336   :  { %3062 = vmatprep.mubr.msk.f32.mxu1 %vm340_vm2, %v3615_v25 }
 0x339   :  { %3063 = vmatmul.mubr.msk.f32.gmra.mrb[10].mxu1 %vm340_vm2, %v3624_v26 }
 0x33a   :  { %3065 = vmatprep.mubr.msk.f32.mxu1 %vm340_vm2, %v3629_v27 }
 0x33d   :  { %3066 = vmatmul.mubr.msk.f32.gmra.mrb[12].mxu1 %vm340_vm2, %v3638_v28 }
 0x33e   :  { %3068 = vmatprep.mubr.msk.f32.mxu1 %vm340_vm2, %v3643_v29 }
 0x341   :  { %3069 = vmatmul.mubr.msk.f32.gmra.mrb[14].mxu1 %vm340_vm2, %v3652_v30 }
 0x342   :  { %3071 = vmatprep.mubr.msk.f32.mxu1 %vm340_vm2, %v3657_v31 }
 0x345   :  { %3072 = vmatmul.mubr.msk.f32.gmra.mrb[16].mxu1 %vm340_vm2, %v3666_v32 }
 0x346   :  { %3074 = vmatprep.mubr.msk.f32.mxu1 %vm340_vm2, %v3671_v33 }
 0x349   :  { %3075 = vmatmul.mubr.msk.f32.gmra.mrb[18].mxu1 %vm340_vm2, %v3680_v34 }
 0x34a   :  { %3077 = vmatprep.mubr.msk.f32.mxu1 %vm340_vm2, %v3685_v35 }
 0x34d   :  { %3078 = vmatmul.mubr.msk.f32.gmra.mrb[20].mxu1 %vm340_vm2, %v3694_v37 }
 0x34e   :  { %3080 = vmatprep.mubr.msk.f32.mxu1 %vm340_vm2, %v3699_v38 }
 0x351   :  { %3081 = vmatmul.mubr.msk.f32.gmra.mrb[22].mxu1 %vm340_vm2, %v3708_v39 }
 0x352   :  { %3083 = vmatprep.mubr.msk.f32.mxu1 %vm340_vm2, %v3713_v40 }
 0x355   :  { %3084 = vmatmul.mubr.msk.f32.gmra.mrb[24].mxu1 %vm340_vm2, %v3722_v41 }
 0x356   :  { %3086 = vmatprep.mubr.msk.f32.mxu1 %vm340_vm2, %v3727_v44 }
 0x359   :  { %3087 = vmatmul.mubr.msk.f32.gmra.mrb[26].mxu1 %vm340_vm2, %v3736_v45 }
 0x35a   :  { %3121 = vmatprep.mubr.msk.f32.mxu1 %vm340_vm2, %v3493_v14 }
 0x3f8   :  { %v3049_v46 = vpop.f32.mrb[0].mxu1 }
 0x3f9   :  { %v491_v47 = vpop.f32.mrb[1].mxu1  ;;  %v642_v51 = vmul.f32 %v3049_v46, %v2804_v49 }
 0x3fa   :  { %v641_v55 = vmul.f32 %v2804_v49, %v491_v47 }
 0x3fb   :  { %v646_v14 = vadd.f32 %v2803_v53, %v642_v51 }
 0x3fc   :  { %v3052_v50 = vpop.f32.mrb[2].mxu1  ;;  %v645_v60 = vadd.f32 %v2803_v53, %v641_v55 }
 0x3fd   :  { %v501_v52 = vpop.f32.mrb[3].mxu1  ;;  %v644_v36 = vmul.f32 %v3052_v50, %v2804_v49 }
 0x3fe   :  { %v643_v61 = vmul.f32 %v2804_v49, %v501_v52 }
 0x3ff   :  { %v648_v42 = vadd.f32 %v2803_v53, %v644_v36 }
 0x400   :  { %v3055_v54 = vpop.f32.mrb[4].mxu1  ;;  %v647_v5 = vadd.f32 %v2803_v53, %v643_v61  ;;  %v2807_v53 = vld [vmem:[%s4393_s4 + $0xf] ss:$0 sm:$0xff] }
 0x401   :  { %v655_v58 = vmul.f32 %v3055_v54, %v2805_v57  ;;  %v511_v59 = vpop.f32.mrb[5].mxu1 }
 0x402   :  { %v654_v63 = vmul.f32 %v2805_v57, %v511_v59 }
 0x403   :  { %v659_v0 = vadd.f32 %v655_v58, %v646_v14 }
 0x404   :  { %v658_v2 = vadd.f32 %v654_v63, %v645_v60  ;;  %v3058_v62 = vpop.f32.mrb[6].mxu1 }
 0x405   :  { %v657_v1 = vmul.f32 %v3058_v62, %v2805_v57  ;;  %v521_v4 = vpop.f32.mrb[7].mxu1 }
 0x406   :  { %v656_v48 = vmul.f32 %v2805_v57, %v521_v4  ;;  %v2808_v4 = vld [vmem:[%s4393_s4 + $0x10] ss:$0 sm:$0xff] }
 0x407   :  { %v661_v10 = vadd.f32 %v657_v1, %v648_v42 }
 0x408   :  { %v660_v11 = vadd.f32 %v656_v48, %v647_v5  ;;  %v3061_v15 = vpop.f32.mrb[8].mxu1 }
 0x409   :  { %v668_v46 = vmul.f32 %v3061_v15, %v2806_v7  ;;  %v531_v47 = vpop.f32.mrb[9].mxu1 }
 0x40a   :  { %v667_v50 = vmul.f32 %v2806_v7, %v531_v47 }
 0x40b   :  { %v672_v49 = vadd.f32 %v668_v46, %v659_v0 }
 0x40c   :  { %v671_v51 = vadd.f32 %v667_v50, %v658_v2  ;;  %v3064_v52 = vpop.f32.mrb[10].mxu1 }
 0x40d   :  { %v670_v55 = vmul.f32 %v3064_v52, %v2806_v7  ;;  %v541_v54 = vpop.f32.mrb[11].mxu1 }
 0x40e   :  { %v669_v14 = vmul.f32 %v2806_v7, %v541_v54 }
 0x40f   :  { %v674_v57 = vadd.f32 %v670_v55, %v661_v10  ;;  %v2809_v55 = vld [vmem:[%s4393_s4 + $0x11] ss:$0 sm:$0xff] }
 0x410   :  { %v673_v36 = vadd.f32 %v669_v14, %v660_v11  ;;  %v3067_v58 = vpop.f32.mrb[12].mxu1 }
 0x411   :  { %v681_v59 = vmul.f32 %v3067_v58, %v2807_v53  ;;  %v551_v60 = vpop.f32.mrb[13].mxu1 }
 0x412   :  { %v680_v61 = vmul.f32 %v2807_v53, %v551_v60 }
 0x413   :  { %v685_v63 = vadd.f32 %v681_v59, %v672_v49 }
 0x414   :  { %v684_v62 = vadd.f32 %v680_v61, %v671_v51  ;;  %v3070_v42 = vpop.f32.mrb[14].mxu1 }
 0x415   :  { %v683_v1 = vmul.f32 %v3070_v42, %v2807_v53  ;;  %v561_v0 = vpop.f32.mrb[15].mxu1 }
 0x416   :  { %v682_v2 = vmul.f32 %v2807_v53, %v561_v0 }
 0x417   :  { %v687_v5 = vadd.f32 %v683_v1, %v674_v57  ;;  %v2810_v1 = vld [vmem:[%s4393_s4 + $0x12] ss:$0 sm:$0xff] }
 0x418   :  { %v686_v48 = vadd.f32 %v682_v2, %v673_v36  ;;  %v3073_v7 = vpop.f32.mrb[16].mxu1 }
 0x419   :  { %v694_v15 = vmul.f32 %v3073_v7, %v2808_v4  ;;  %v571_v10 = vpop.f32.mrb[17].mxu1 }
 0x41a   :  { %v693_v11 = vmul.f32 %v2808_v4, %v571_v10 }
 0x41b   :  { %v698_v46 = vadd.f32 %v694_v15, %v685_v63 }
 0x41c   :  { %v697_v47 = vadd.f32 %v693_v11, %v684_v62  ;;  %v3076_v50 = vpop.f32.mrb[18].mxu1 }
 0x41d   :  { %v696_v52 = vmul.f32 %v3076_v50, %v2808_v4  ;;  %v581_v49 = vpop.f32.mrb[19].mxu1 }
 0x41e   :  { %v695_v51 = vmul.f32 %v2808_v4, %v581_v49 }
 0x41f   :  { %v700_v54 = vadd.f32 %v696_v52, %v687_v5 }
 0x420   :  { %v699_v14 = vadd.f32 %v695_v51, %v686_v48  ;;  %v3079_v53 = vpop.f32.mrb[20].mxu1 }
 0x421   :  { %v707_v58 = vmul.f32 %v3079_v53, %v2809_v55  ;;  %v591_v57 = vpop.f32.mrb[21].mxu1 }
 0x422   :  { %v706_v36 = vmul.f32 %v2809_v55, %v591_v57 }
 0x423   :  { %v711_v59 = vadd.f32 %v707_v58, %v698_v46 }
 0x424   :  { %v710_v60 = vadd.f32 %v706_v36, %v697_v47  ;;  %v3082_v61 = vpop.f32.mrb[22].mxu1 }
 0x425   :  { %v709_v42 = vmul.f32 %v3082_v61, %v2809_v55  ;;  %v601_v63 = vpop.f32.mrb[23].mxu1 }
 0x426   :  { %v708_v62 = vmul.f32 %v2809_v55, %v601_v63 }
 0x427   :  { %v713_v0 = vadd.f32 %v709_v42, %v700_v54 }
 0x428   :  { %v712_v2 = vadd.f32 %v708_v62, %v699_v14  ;;  %v3085_v4 = vpop.f32.mrb[24].mxu1 }
 0x429   :  { %v720_v7 = vmul.f32 %v3085_v4, %v2810_v1  ;;  %v611_v5 = vpop.f32.mrb[25].mxu1 }
 0x42a   :  { %v719_v48 = vmul.f32 %v2810_v1, %v611_v5 }
 0x42b   :  { %v724_v15 = vadd.f32 %v720_v7, %v711_v59 }
 0x42c   :  { %v3088_v10 = vpop.f32.mrb[26].mxu1  ;;  %v723_v11 = vadd.f32 %v719_v48, %v710_v60 }
 0x42d   :  { %v722_v50 = vmul.f32 %v3088_v10, %v2810_v1  ;;  %v621_v46 = vpop.f32.mrb[27].mxu1  ;;  %v730_v47 = vsel %vm340_vm2, %v724_v15, 0.0 }
 0x42e   :  { %v721_v52 = vmul.f32 %v2810_v1, %v621_v46  ;;  %731 = vadd.xlane.f32.xlu0 %v730_v47  ;;  %v727_v49 = vsel %vm340_vm2, %v723_v11, 0.0  ;;  %v3247_v46 = vld [vmem:[%s4391_s3 + $0x40] sm:$0xff]  }
 0x42f   :  { %728 = vadd.xlane.f32.xlu1 %v727_v49  ;;  %v726_v51 = vadd.f32 %v722_v50, %v713_v0 }
 0x430   :  { %v725_v55 = vadd.f32 %v721_v52, %v712_v2 }
 0x431   :  { %v736_v54 = vsel %vm340_vm2, %v726_v51, 0.0 }
 0x432   :  { %737 = vadd.xlane.f32.xlu0 %v736_v54  ;;  %v733_v14 = vsel %vm340_vm2, %v725_v55, 0.0 }
 0x433   :  { %734 = vadd.xlane.f32.xlu1 %v733_v14 }
 0x4bb   :  { %v732_v53 = vpop.xlane.xlu0 %731 }
 0x4bc   :  { %v741_v58 = vmul.f32 0.03125, %v732_v53  ;;  %v729_v57 = vpop.xlane.xlu1 %728 }
 0x4bd   :  { %v740_v36 = vmul.f32 0.03125, %v729_v57 }
 0x4be   :  { %v745_v59 = vsub.f32 %v724_v15, %v741_v58 }
 0x4bf   :  { %v744_v60 = vsub.f32 %v723_v11, %v740_v36  ;;  %v738_v61 = vpop.xlane.xlu0 %737  ;;  %v3246_v11 = vld [vmem:[%s4391_s3 + $0x38] sm:$0xff]  }
 0x4c0   :  { %v743_v42 = vmul.f32 0.03125, %v738_v61  ;;  %v735_v63 = vpop.xlane.xlu1 %734  ;;  %v749_v62 = vmul.f32 %v745_v59, %v745_v59  ;;  %3089 = vmatprep.subr.bf16.mxu0 %v3246_v11 }
 0x4c1   :  { %v742_v1 = vmul.f32 0.03125, %v735_v63  ;;  %v748_v4 = vmul.f32 %v744_v60, %v744_v60  ;;  %3090 = vmatpush3.bf16.msra.mxu0 %v3246_v11  ;;  %v2811_v63 = vld [vmem:[%s4393_s4 + $0x7] ss:$0 sm:$0xff] }
 0x4c2   :  { %v747_v0 = vsub.f32 %v726_v51, %v743_v42  ;;  %v755_v2 = vsel %vm340_vm2, %v749_v62, 0.0  ;;  %3091 = vmatprep.subr.bf16.mxu0 %v3247_v46 }
 0x4c3   :  { %v746_v7 = vsub.f32 %v725_v55, %v742_v1  ;;  %756 = vadd.xlane.f32.xlu0 %v755_v2  ;;  %v752_v5 = vsel %vm340_vm2, %v748_v4, 0.0  ;;  %v2812_v2 = vld [vmem:[%s4393_s4 + $0x8] ss:$0 sm:$0xff] }
 0x4c4   :  { %753 = vadd.xlane.f32.xlu1 %v752_v5  ;;  %v751_v48 = vmul.f32 %v747_v0, %v747_v0 }
 0x4c5   :  { %v750_v10 = vmul.f32 %v746_v7, %v746_v7  ;;  %3092 = vmatpush3.bf16.msra.mxu0 %v3247_v46 }
 0x4c6   :  { %v761_v50 = vsel %vm340_vm2, %v751_v48, 0.0 }
 0x4c7   :  { %762 = vadd.xlane.f32.xlu0 %v761_v50  ;;  %v758_v15 = vsel %vm340_vm2, %v750_v10, 0.0 }
 0x4c8   :  { %759 = vadd.xlane.f32.xlu1 %v758_v15 }
 0x550   :  { %v757_v47 = vpop.xlane.xlu0 %756 }
 0x551   :  { %v765_v52 = vmul.f32 0.03125, %v757_v47  ;;  %v754_v49 = vpop.xlane.xlu1 %753 }
 0x552   :  { %v764_v51 = vmul.f32 0.03125, %v754_v49 }
 0x553   :  { %v769_v55 = vadd.f32 1e-06, %v765_v52 }
 0x554   :  { %v768_v54 = vadd.f32 1e-06, %v764_v51  ;;  %v763_v14 = vpop.xlane.xlu0 %762 }
 0x555   :  { %3280 = vrsqrt.f32 %v769_v55  ;;  %v767_v53 = vmul.f32 0.03125, %v763_v14  ;;  %v760_v58 = vpop.xlane.xlu1 %759  ;;  %v3251_v14 = vld [vmem:[%s4391_s3 + $0x60] sm:$0xff]  }
 0x556   :  { %3282 = vrsqrt.f32 %v768_v54  ;;  %v766_v57 = vmul.f32 0.03125, %v760_v58  ;;  %v3248_v54 = vld [vmem:[%s4391_s3 + $0x48] sm:$0xff]   ;;  %v3253_v58 = vld [vmem:[%s4391_s3 + $0x70] sm:$0xff]  }
 0x557   :  { %v771_v36 = vadd.f32 1e-06, %v767_v53  ;;  %3097 = vmatprep.subr.bf16.mxu0 %v3248_v54  ;;  %v3252_v53 = vld [vmem:[%s4391_s3 + $0x68] sm:$0xff]  }
 0x558   :  { %v770_v61 = vadd.f32 1e-06, %v766_v57  ;;  %v2813_v57 = vld [vmem:[%s4393_s4 + $0x9] ss:$0 sm:$0xff] }
 0x559   :  { %3284 = vrsqrt.f32 %v771_v36 }
 0x55a   :  { %3286 = vrsqrt.f32 %v770_v61 }
 0x55f   :  { %v3281_v42 = vpop.eup %3280 }
 0x560   :  { %v3283_v62 = vpop.eup %3282  ;;  %v777_v1 = vmul.f32 %v3281_v42, %v745_v59 }
 0x561   :  { %v776_v4 = vmul.f32 %v3283_v62, %v744_v60 }
 0x562   :  { %v786_v5 = vmul.f32 %v2811_v63, %v777_v1 }
 0x563   :  { %v3285_v48 = vpop.eup %3284  ;;  %v785_v10 = vmul.f32 %v2811_v63, %v776_v4 }
 0x564   :  { %v3287_v50 = vpop.eup %3286  ;;  %v779_v15 = vmul.f32 %v3285_v48, %v747_v0  ;;  %v795_v11 = vadd.f32 %v2812_v2, %v786_v5  ;;  %v3249_v0 = vld [vmem:[%s4391_s3 + $0x50] sm:$0xff]  }
 0x565   :  { %v778_v46 = vmul.f32 %v3287_v50, %v746_v7  ;;  %v794_v47 = vadd.f32 %v2812_v2, %v785_v10  ;;  %v3250_v7 = vld [vmem:[%s4391_s3 + $0x58] sm:$0xff]  }
 0x566   :  { %v788_v52 = vmul.f32 %v2811_v63, %v779_v15 }
 0x567   :  { %v787_v49 = vmul.f32 %v2811_v63, %v778_v46  ;;  %v798_v51 = vpack.c.bf16 %v795_v11, %v794_v47 }
 0x568   :  { %v797_v55 = vadd.f32 %v2812_v2, %v788_v52 }
 0x569   :  { %3093 = vmatprep.mubr.msk.bf16.mxu0 %vm340_vm2, %v798_v51  ;;  %v796_v59 = vadd.f32 %v2812_v2, %v787_v49 }
 0x56b   :  { %v799_v60 = vpack.c.bf16 %v797_v55, %v796_v59 }
 0x56d   :  { %3094 = vmatmul.mubr.msk.bf16.vlgmr.msra.gmra.mrb[4].mxu0 %vm340_vm2, %v799_v60 }
 0x56e   :  { %3098 = vmatpush3.bf16.msra.mxu0 %v3248_v54 }
 0x56f   :  { %3099 = vmatprep.subr.bf16.mxu0 %v3249_v0 }
 0x572   :  { %3100 = vmatpush3.bf16.msra.mxu0 %v3249_v0 }
 0x573   :  { %3101 = vmatprep.subr.bf16.mxu0 %v3250_v7 }
 0x576   :  { %3102 = vmatpush3.bf16.msra.mxu0 %v3250_v7 }
 0x577   :  { %3103 = vmatprep.subr.bf16.mxu0 %v3251_v14 }
 0x57a   :  { %3104 = vmatpush3.bf16.msra.mxu0 %v3251_v14 }
 0x57b   :  { %3105 = vmatprep.subr.bf16.mxu0 %v3252_v53 }
 0x57e   :  { %3106 = vmatpush3.bf16.msra.mxu0 %v3252_v53 }
 0x57f   :  { %3107 = vmatprep.subr.bf16.mxu0 %v3253_v58 }
 0x582   :  { %3108 = vmatpush3.bf16.msra.mxu0 %v3253_v58 }
 0x640   :  { %v3095_v36 = vpop.f32.mrb[4].mxu0 }
 0x641   :  { %v870_v61 = vadd.f32 %v3095_v36, %v2813_v57  ;;  %v861_v42 = vpop.f32.mrb[5].mxu0 }
 0x642   :  { %v862_v63 = vadd.f32 %v2813_v57, %v861_v42  ;;  %v3096_v62 = vpop.f32.mrb[6].mxu0 }
 0x643   :  { %v878_v1 = vmul.f32 %v870_v61, %v870_v61  ;;  %v873_v4 = vadd.f32 %v3096_v62, %v2813_v57  ;;  %v864_v2 = vpop.f32.mrb[7].mxu0 }
 0x644   :  { %v876_v5 = vmul.f32 %v862_v63, %v862_v63  ;;  %v865_v48 = vadd.f32 %v2813_v57, %v864_v2 }
 0x645   :  { %v882_v10 = vmul.f32 %v878_v1, %v870_v61  ;;  %v879_v50 = vmul.f32 %v873_v4, %v873_v4 }
 0x646   :  { %v880_v15 = vmul.f32 %v876_v5, %v862_v63  ;;  %v877_v11 = vmul.f32 %v865_v48, %v865_v48 }
 0x647   :  { %v886_v46 = vmul.f32 0.044715, %v882_v10  ;;  %v883_v47 = vmul.f32 %v879_v50, %v873_v4 }
 0x648   :  { %v884_v52 = vmul.f32 0.044715, %v880_v15  ;;  %v881_v49 = vmul.f32 %v877_v11, %v865_v48 }
 0x649   :  { %v890_v51 = vadd.f32 %v886_v46, %v870_v61  ;;  %v887_v55 = vmul.f32 0.044715, %v883_v47 }
 0x64a   :  { %v888_v59 = vadd.f32 %v884_v52, %v862_v63  ;;  %v885_v60 = vmul.f32 0.044715, %v881_v49 }
 0x64b   :  { %v894_v54 = vmul.f32 0.7978846, %v890_v51  ;;  %v891_v0 = vadd.f32 %v887_v55, %v873_v4 }
 0x64c   :  { %v892_v7 = vmul.f32 0.7978846, %v888_v59  ;;  %v889_v14 = vadd.f32 %v885_v60, %v865_v48  ;;  %v2818_v60 = vld [vmem:[%s4393_s4 + $0xa] ss:$0 sm:$0xff] }
 0x64d   :  { %3288 = vtanh.f32 %v894_v54  ;;  %v895_v53 = vmul.f32 0.7978846, %v891_v0 }
 0x64e   :  { %3290 = vtanh.f32 %v892_v7  ;;  %v893_v58 = vmul.f32 0.7978846, %v889_v14 }
 0x64f   :  { %3292 = vtanh.f32 %v895_v53 }
 0x650   :  { %3294 = vtanh.f32 %v893_v58 }
 0x657   :  { %v3289_v57 = vpop.eup %3288 }
 0x658   :  { %v3291_v36 = vpop.eup %3290  ;;  %v902_v42 = vadd.f32 1.0, %v3289_v57 }
 0x659   :  { %v3293_v62 = vpop.eup %3292  ;;  %v900_v1 = vadd.f32 1.0, %v3291_v36 }
 0x65a   :  { %v3295_v2 = vpop.eup %3294  ;;  %v906_v5 = vmul.f32 0.5, %v902_v42  ;;  %v903_v10 = vadd.f32 1.0, %v3293_v62 }
 0x65b   :  { %v904_v50 = vmul.f32 0.5, %v900_v1  ;;  %v901_v15 = vadd.f32 1.0, %v3295_v2 }
 0x65c   :  { %v907_v11 = vmul.f32 0.5, %v903_v10  ;;  %v910_v47 = vmul.f32 %v906_v5, %v870_v61  ;;  %v2827_v61 = vld [vmem:[%s4393_s4 + $0xb] ss:$0 sm:$0xff] }
 0x65d   :  { %v905_v46 = vmul.f32 0.5, %v901_v15  ;;  %v908_v49 = vmul.f32 %v904_v50, %v862_v63 }
 0x65e   :  { %v911_v52 = vmul.f32 %v907_v11, %v873_v4 }
 0x65f   :  { %v909_v51 = vmul.f32 %v905_v46, %v865_v48 }
 0x660   :  { %v913_v55 = vpack.c.bf16 %v911_v52, %v910_v47 }
 0x661   :  { %v912_v59 = vpack.c.bf16 %v909_v51, %v908_v49 }
 0x663   :  { %3109 = vmatprep.mubr.msk.bf16.mxu0 %vm967_vm3, %v912_v59 }
 0x664   :  { %3110 = vmatmul.mubr.msk.bf16.vlgmr.msra.gmra.mrb[8].mxu0 %vm967_vm3, %v913_v55  ;;  %v2860_v55 = vld [vmem:[%s4393_s4 + $0x1c] ss:$0 sm:$0xff] }
 0x737   :  { %v3111_v54 = vpop.f32.mrb[8].mxu0 }
 0x738   :  { %v1017_v0 = vadd.f32 %v3111_v54, %v2818_v60  ;;  %v1008_v4 = vpop.f32.mrb[9].mxu0 }
 0x739   :  { %v1009_v63 = vadd.f32 %v2818_v60, %v1008_v4  ;;  %v3112_v48 = vpop.f32.mrb[10].mxu0 }
 0x73a   :  { %v1020_v7 = vadd.f32 %v3112_v48, %v2818_v60  ;;  %v1011_v14 = vpop.f32.mrb[11].mxu0  ;;  %v1030_v53 = vmul.f32 %v2827_v61, %v1017_v0 }
 0x73b   :  { %v1028_v58 = vmul.f32 %v2827_v61, %v1009_v63  ;;  %v1012_v57 = vadd.f32 %v2818_v60, %v1011_v14 }
 0x73c   :  { %v1031_v36 = vmul.f32 %v2827_v61, %v1020_v7  ;;  %v1034_v2 = vadd.f32 %v1030_v53, %v3544_v12 }
 0x73d   :  { %v1032_v42 = vadd.f32 %v1028_v58, %v3526_v6  ;;  %v1029_v62 = vmul.f32 %v2827_v61, %v1012_v57  ;;  %v2861_v57 = vld [vmem:[%s4393_s4 + $0x1d] ss:$0 sm:$0xff] }
 0x73e   :  { %v1035_v1 = vadd.f32 %v1031_v36, %v3547_v13  ;;  %v3833_v6 = vadd.f32 %v1034_v2, %v3534_v8 }
 0x73f   :  { %v1033_v5 = vadd.f32 %v1029_v62, %v3529_v56  ;;  %v3822_v10 = vadd.f32 %v1032_v42, %v3517_v3  ;;  %v2857_v56 = vld [vmem:[%s4393_s4 + $0x19] ss:$0 sm:$0xff] }
 0x740   :  { %v3828_v15 = vadd.f32 %v1035_v1, %v3539_v9 }
 0x741   :  { %v3825_v50 = vadd.f32 %v1033_v5, %v3522_v43 }
 0x742   :  { %v3207_v12 = vpack.c.bf16 %v3828_v15, %v3833_v6 }
 0x743   :  { %v3203_v11 = vpack.c.bf16 %v3825_v50, %v3822_v10 }
 0x745   :  { %3204 = vmatprep.subr.bf16.mxu1 %v3203_v11 }
 0x746   :  { %3206 = vmatpush3.bf16.msra.mxu1 %v3203_v11 }
 0x747   :  { %3208 = vmatprep.subr.bf16.mxu1 %v3207_v12 }
 0x74a   :  { %3210 = vmatpush3.bf16.msra.mxu1 %v3207_v12 }
 0x74d   :  { %3122 = vmatmul.mubr.msk.f32.vlgmr.msra.gmra.mrb[28].mxu1 %vm340_vm2, %v3554_v16  ;;  %v2856_v16 = vld [vmem:[%s4393_s4 + $0x13] ss:$0 sm:$0xff] }
 0x74e   :  { %3124 = vmatprep.mubr.msk.f32.mxu1 %vm340_vm2, %v3559_v17 }
 0x751   :  { %3125 = vmatmul.mubr.msk.f32.gmra.mrb[30].mxu1 %vm340_vm2, %v3568_v18  ;;  %v2858_v18 = vld [vmem:[%s4393_s4 + $0x1a] ss:$0 sm:$0xff] }
 0x752   :  { %3127 = vmatprep.mubr.msk.f32.mxu1 %vm340_vm2, %v3573_v19 }
 0x755   :  { %3128 = vmatmul.mubr.msk.f32.gmra.mrb[32].mxu1 %vm340_vm2, %v3582_v20 }
 0x756   :  { %3130 = vmatprep.mubr.msk.f32.mxu1 %vm340_vm2, %v3587_v21 }
 0x759   :  { %3131 = vmatmul.mubr.msk.f32.gmra.mrb[34].mxu1 %vm340_vm2, %v3596_v22 }
 0x75a   :  { %3133 = vmatprep.mubr.msk.f32.mxu1 %vm340_vm2, %v3601_v23 }
 0x75d   :  { %3134 = vmatmul.mubr.msk.f32.gmra.mrb[36].mxu1 %vm340_vm2, %v3610_v24 }
 0x75e   :  { %3136 = vmatprep.mubr.msk.f32.mxu1 %vm340_vm2, %v3615_v25 }
 0x761   :  { %3137 = vmatmul.mubr.msk.f32.gmra.mrb[38].mxu1 %vm340_vm2, %v3624_v26 }
 0x762   :  { %3139 = vmatprep.mubr.msk.f32.mxu1 %vm340_vm2, %v3629_v27 }
 0x765   :  { %3140 = vmatmul.mubr.msk.f32.gmra.mrb[40].mxu1 %vm340_vm2, %v3638_v28 }
 0x766   :  { %3142 = vmatprep.mubr.msk.f32.mxu1 %vm340_vm2, %v3643_v29 }
 0x769   :  { %3143 = vmatmul.mubr.msk.f32.gmra.mrb[42].mxu1 %vm340_vm2, %v3652_v30 }
 0x76a   :  { %3145 = vmatprep.mubr.msk.f32.mxu1 %vm340_vm2, %v3657_v31 }
 0x76d   :  { %3146 = vmatmul.mubr.msk.f32.gmra.mrb[44].mxu1 %vm340_vm2, %v3666_v32 }
 0x76e   :  { %3148 = vmatprep.mubr.msk.f32.mxu1 %vm340_vm2, %v3671_v33 }
 0x771   :  { %3149 = vmatmul.mubr.msk.f32.gmra.mrb[46].mxu1 %vm340_vm2, %v3680_v34 }
 0x772   :  { %3151 = vmatprep.mubr.msk.f32.mxu1 %vm340_vm2, %v3685_v35  ;;  %v2859_v35 = vld [vmem:[%s4393_s4 + $0x1b] ss:$0 sm:$0xff] }
 0x775   :  { %3152 = vmatmul.mubr.msk.f32.gmra.mrb[48].mxu1 %vm340_vm2, %v3694_v37 }
 0x776   :  { %3154 = vmatprep.mubr.msk.f32.mxu1 %vm340_vm2, %v3699_v38 }
 0x779   :  { %3155 = vmatmul.mubr.msk.f32.gmra.mrb[50].mxu1 %vm340_vm2, %v3708_v39 }
 0x77a   :  { %3157 = vmatprep.mubr.msk.f32.mxu1 %vm340_vm2, %v3713_v40 }
 0x77d   :  { %3158 = vmatmul.mubr.msk.f32.gmra.mrb[52].mxu1 %vm340_vm2, %v3722_v41 }
 0x77e   :  { %3160 = vmatprep.mubr.msk.f32.mxu1 %vm340_vm2, %v3727_v44 }
 0x781   :  { %3161 = vmatmul.mubr.msk.f32.gmra.mrb[54].mxu1 %vm340_vm2, %v3736_v45 }
 0x820   :  { %v3123_v3 = vpop.f32.mrb[28].mxu1 }
 0x821   :  { %v1106_v43 = vpop.f32.mrb[29].mxu1  ;;  %v1257_v9 = vmul.f32 %v3123_v3, %v2857_v56 }
 0x822   :  { %v1256_v17 = vmul.f32 %v2857_v56, %v1106_v43 }
 0x823   :  { %v1261_v20 = vadd.f32 %v2856_v16, %v1257_v9  ;;  %v2862_v9 = vld [vmem:[%s4393_s4 + $0x1e] ss:$0 sm:$0xff] }
 0x824   :  { %v3126_v8 = vpop.f32.mrb[30].mxu1  ;;  %v1260_v24 = vadd.f32 %v2856_v16, %v1256_v17 }
 0x825   :  { %v1116_v13 = vpop.f32.mrb[31].mxu1  ;;  %v1259_v21 = vmul.f32 %v3126_v8, %v2857_v56 }
 0x826   :  { %v1258_v25 = vmul.f32 %v2857_v56, %v1116_v13 }
 0x827   :  { %v1263_v30 = vadd.f32 %v2856_v16, %v1259_v21 }
 0x828   :  { %v3129_v19 = vpop.f32.mrb[32].mxu1  ;;  %v1262_v33 = vadd.f32 %v2856_v16, %v1258_v25 }
 0x829   :  { %v1270_v22 = vmul.f32 %v3129_v19, %v2858_v18  ;;  %v1126_v23 = vpop.f32.mrb[33].mxu1 }
 0x82a   :  { %v1269_v26 = vmul.f32 %v2858_v18, %v1126_v23 }
 0x82b   :  { %v1274_v27 = vadd.f32 %v1270_v22, %v1261_v20 }
 0x82c   :  { %v1273_v28 = vadd.f32 %v1269_v26, %v1260_v24  ;;  %v3132_v29 = vpop.f32.mrb[34].mxu1 }
 0x82d   :  { %v1272_v31 = vmul.f32 %v3132_v29, %v2858_v18  ;;  %v1136_v32 = vpop.f32.mrb[35].mxu1 }
 0x82e   :  { %v1271_v34 = vmul.f32 %v2858_v18, %v1136_v32 }
 0x82f   :  { %v1276_v37 = vadd.f32 %v1272_v31, %v1263_v30 }
 0x830   :  { %v1275_v38 = vadd.f32 %v1271_v34, %v1262_v33  ;;  %v3135_v39 = vpop.f32.mrb[36].mxu1 }
 0x831   :  { %v1283_v40 = vmul.f32 %v3135_v39, %v2859_v35  ;;  %v1146_v41 = vpop.f32.mrb[37].mxu1 }
 0x832   :  { %v1282_v44 = vmul.f32 %v2859_v35, %v1146_v41 }
 0x833   :  { %v1287_v45 = vadd.f32 %v1283_v40, %v1274_v27  ;;  %v2863_v27 = vld [vmem:[%s4393_s4 + $0x1f] ss:$0 sm:$0xff] }
 0x834   :  { %v1286_v46 = vadd.f32 %v1282_v44, %v1273_v28  ;;  %v3138_v47 = vpop.f32.mrb[38].mxu1 }
 0x835   :  { %v1285_v52 = vmul.f32 %v3138_v47, %v2859_v35  ;;  %v1156_v49 = vpop.f32.mrb[39].mxu1 }
 0x836   :  { %v1284_v51 = vmul.f32 %v2859_v35, %v1156_v49 }
 0x837   :  { %v1289_v59 = vadd.f32 %v1285_v52, %v1276_v37 }
 0x838   :  { %v1288_v60 = vadd.f32 %v1284_v51, %v1275_v38  ;;  %v3141_v54 = vpop.f32.mrb[40].mxu1 }
 0x839   :  { %v1296_v0 = vmul.f32 %v3141_v54, %v2860_v55  ;;  %v1166_v61 = vpop.f32.mrb[41].mxu1 }
 0x83a   :  { %v1295_v4 = vmul.f32 %v2860_v55, %v1166_v61 }
 0x83b   :  { %v1300_v63 = vadd.f32 %v1296_v0, %v1287_v45 }
 0x83c   :  { %v1299_v48 = vadd.f32 %v1295_v4, %v1286_v46  ;;  %v3144_v7 = vpop.f32.mrb[42].mxu1 }
 0x83d   :  { %v1298_v14 = vmul.f32 %v3144_v7, %v2860_v55  ;;  %v1176_v53 = vpop.f32.mrb[43].mxu1 }
 0x83e   :  { %v1297_v58 = vmul.f32 %v2860_v55, %v1176_v53 }
 0x83f   :  { %v1302_v36 = vadd.f32 %v1298_v14, %v1289_v59 }
 0x840   :  { %v1301_v42 = vadd.f32 %v1297_v58, %v1288_v60  ;;  %v3147_v62 = vpop.f32.mrb[44].mxu1 }
 0x841   :  { %v1309_v1 = vmul.f32 %v3147_v62, %v2861_v57  ;;  %v1186_v2 = vpop.f32.mrb[45].mxu1 }
 0x842   :  { %v1308_v5 = vmul.f32 %v2861_v57, %v1186_v2  ;;  %v3254_v2 = vld [vmem:[%s4391_s3 + $0x78] sm:$0xff]  }
 0x843   :  { %v1313_v11 = vadd.f32 %v1309_v1, %v1300_v63  ;;  %3163 = vmatprep.subr.bf16.mxu0 %v3254_v2 }
 0x844   :  { %v1312_v12 = vadd.f32 %v1308_v5, %v1299_v48  ;;  %v3150_v3 = vpop.f32.mrb[46].mxu1  ;;  %3164 = vmatpush3.bf16.msra.mxu0 %v3254_v2  ;;  %v3255_v5 = vld [vmem:[%s4391_s3 + $0x80] sm:$0xff]  }
 0x845   :  { %v1311_v43 = vmul.f32 %v3150_v3, %v2861_v57  ;;  %v1196_v56 = vpop.f32.mrb[47].mxu1  ;;  %3165 = vmatprep.subr.bf16.mxu0 %v3255_v5 }
 0x846   :  { %v1310_v8 = vmul.f32 %v2861_v57, %v1196_v56 }
 0x847   :  { %v1315_v13 = vadd.f32 %v1311_v43, %v1302_v36 }
 0x848   :  { %v1314_v16 = vadd.f32 %v1310_v8, %v1301_v42  ;;  %v3153_v17 = vpop.f32.mrb[48].mxu1  ;;  %3166 = vmatpush3.bf16.msra.mxu0 %v3255_v5 }
 0x849   :  { %v1322_v18 = vmul.f32 %v3153_v17, %v2862_v9  ;;  %v1206_v19 = vpop.f32.mrb[49].mxu1 }
 0x84a   :  { %v1321_v20 = vmul.f32 %v2862_v9, %v1206_v19 }
 0x84b   :  { %v1326_v21 = vadd.f32 %v1322_v18, %v1313_v11 }
 0x84c   :  { %v1325_v22 = vadd.f32 %v1321_v20, %v1312_v12  ;;  %v3156_v23 = vpop.f32.mrb[50].mxu1 }
 0x84d   :  { %v1324_v24 = vmul.f32 %v3156_v23, %v2862_v9  ;;  %v1216_v25 = vpop.f32.mrb[51].mxu1 }
 0x84e   :  { %v1323_v26 = vmul.f32 %v2862_v9, %v1216_v25  ;;  %v2865_v25 = vld [vmem:[%s4393_s4 + $0x15] ss:$0 sm:$0xff] }
 0x84f   :  { %v1328_v28 = vadd.f32 %v1324_v24, %v1315_v13 }
 0x850   :  { %v1327_v29 = vadd.f32 %v1323_v26, %v1314_v16  ;;  %v3159_v30 = vpop.f32.mrb[52].mxu1 }
 0x851   :  { %v1335_v31 = vmul.f32 %v3159_v30, %v2863_v27  ;;  %v1226_v32 = vpop.f32.mrb[53].mxu1 }
 0x852   :  { %v1334_v33 = vmul.f32 %v2863_v27, %v1226_v32 }
 0x853   :  { %v1339_v34 = vadd.f32 %v1335_v31, %v1326_v21  ;;  %v2864_v21 = vld [vmem:[%s4393_s4 + $0x14] ss:$0 sm:$0xff] }
 0x854   :  { %v3162_v35 = vpop.f32.mrb[54].mxu1  ;;  %v1338_v37 = vadd.f32 %v1334_v33, %v1325_v22 }
 0x855   :  { %v1337_v38 = vmul.f32 %v3162_v35, %v2863_v27  ;;  %v1236_v39 = vpop.f32.mrb[55].mxu1  ;;  %v1345_v40 = vsel %vm340_vm2, %v1339_v34, 0.0 }
 0x856   :  { %v1336_v41 = vmul.f32 %v2863_v27, %v1236_v39  ;;  %1346 = vadd.xlane.f32.xlu0 %v1345_v40  ;;  %v1342_v44 = vsel %vm340_vm2, %v1338_v37, 0.0 }
 0x857   :  { %1343 = vadd.xlane.f32.xlu1 %v1342_v44  ;;  %v1341_v45 = vadd.f32 %v1337_v38, %v1328_v28  ;;  %v3257_v44 = vld [vmem:[%s4391_s3 + $0x90] sm:$0xff]  }
 0x858   :  { %v1340_v46 = vadd.f32 %v1336_v41, %v1327_v29  ;;  %v3256_v41 = vld [vmem:[%s4391_s3 + $0x88] sm:$0xff]  }
 0x859   :  { %v1351_v47 = vsel %vm340_vm2, %v1341_v45, 0.0  ;;  %3171 = vmatprep.subr.bf16.mxu0 %v3256_v41 }
 0x85a   :  { %1352 = vadd.xlane.f32.xlu0 %v1351_v47  ;;  %v1348_v52 = vsel %vm340_vm2, %v1340_v46, 0.0  ;;  %v3260_v47 = vld [vmem:[%s4391_s3 + $0xa8] sm:$0xff]  }
 0x85b   :  { %1349 = vadd.xlane.f32.xlu1 %v1348_v52  ;;  %v3261_v52 = vld [vmem:[%s4391_s3 + $0xb0] sm:$0xff]  }
 0x8e3   :  { %v1347_v49 = vpop.xlane.xlu0 %1346 }
 0x8e4   :  { %v1355_v51 = vmul.f32 0.03125, %v1347_v49  ;;  %v1344_v55 = vpop.xlane.xlu1 %1343  ;;  %v2866_v49 = vld [vmem:[%s4393_s4 + $0x16] ss:$0 sm:$0xff] }
 0x8e5   :  { %v1354_v59 = vmul.f32 0.03125, %v1344_v55 }
 0x8e6   :  { %v1359_v60 = vsub.f32 %v1339_v34, %v1355_v51 }
 0x8e7   :  { %v1358_v54 = vsub.f32 %v1338_v37, %v1354_v59  ;;  %v1353_v0 = vpop.xlane.xlu0 %1352 }
 0x8e8   :  { %v1357_v61 = vmul.f32 0.03125, %v1353_v0  ;;  %v1350_v4 = vpop.xlane.xlu1 %1349  ;;  %v1363_v63 = vmul.f32 %v1359_v60, %v1359_v60 }
 0x8e9   :  { %v1356_v48 = vmul.f32 0.03125, %v1350_v4  ;;  %v1362_v7 = vmul.f32 %v1358_v54, %v1358_v54 }
 0x8ea   :  { %v1361_v14 = vsub.f32 %v1341_v45, %v1357_v61  ;;  %v1369_v53 = vsel %vm340_vm2, %v1363_v63, 0.0  ;;  %v3258_v45 = vld [vmem:[%s4391_s3 + $0x98] sm:$0xff]  }
 0x8eb   :  { %v1360_v58 = vsub.f32 %v1340_v46, %v1356_v48  ;;  %1370 = vadd.xlane.f32.xlu0 %v1369_v53  ;;  %v1366_v57 = vsel %vm340_vm2, %v1362_v7, 0.0  ;;  %v3259_v46 = vld [vmem:[%s4391_s3 + $0xa0] sm:$0xff]  }
 0x8ec   :  { %1367 = vadd.xlane.f32.xlu1 %v1366_v57  ;;  %v1365_v36 = vmul.f32 %v1361_v14, %v1361_v14 }
 0x8ed   :  { %v1364_v42 = vmul.f32 %v1360_v58, %v1360_v58 }
 0x8ee   :  { %v1375_v62 = vsel %vm340_vm2, %v1365_v36, 0.0 }
 0x8ef   :  { %1376 = vadd.xlane.f32.xlu0 %v1375_v62  ;;  %v1372_v1 = vsel %vm340_vm2, %v1364_v42, 0.0 }
 0x8f0   :  { %1373 = vadd.xlane.f32.xlu1 %v1372_v1 }
 0x978   :  { %v1371_v11 = vpop.xlane.xlu0 %1370 }
 0x979   :  { %v1379_v12 = vmul.f32 0.03125, %v1371_v11  ;;  %v1368_v3 = vpop.xlane.xlu1 %1367 }
 0x97a   :  { %v1378_v43 = vmul.f32 0.03125, %v1368_v3 }
 0x97b   :  { %v1383_v56 = vadd.f32 1e-06, %v1379_v12 }
 0x97c   :  { %v1382_v8 = vadd.f32 1e-06, %v1378_v43  ;;  %v1377_v9 = vpop.xlane.xlu0 %1376 }
 0x97d   :  { %3296 = vrsqrt.f32 %v1383_v56  ;;  %v1381_v13 = vmul.f32 0.03125, %v1377_v9  ;;  %v1374_v16 = vpop.xlane.xlu1 %1373 }
 0x97e   :  { %3298 = vrsqrt.f32 %v1382_v8  ;;  %v1380_v17 = vmul.f32 0.03125, %v1374_v16 }
 0x97f   :  { %v1385_v18 = vadd.f32 1e-06, %v1381_v13 }
 0x980   :  { %v1384_v19 = vadd.f32 1e-06, %v1380_v17 }
 0x981   :  { %3300 = vrsqrt.f32 %v1385_v18 }
 0x982   :  { %3302 = vrsqrt.f32 %v1384_v19 }
 0x987   :  { %v3297_v20 = vpop.eup %3296 }
 0x988   :  { %v3299_v22 = vpop.eup %3298  ;;  %v1391_v23 = vmul.f32 %v3297_v20, %v1359_v60 }
 0x989   :  { %v1390_v24 = vmul.f32 %v3299_v22, %v1358_v54 }
 0x98a   :  { %v1400_v26 = vmul.f32 %v2864_v21, %v1391_v23 }
 0x98b   :  { %v3301_v27 = vpop.eup %3300  ;;  %v1399_v28 = vmul.f32 %v2864_v21, %v1390_v24 }
 0x98c   :  { %v3303_v29 = vpop.eup %3302  ;;  %v1393_v30 = vmul.f32 %v3301_v27, %v1361_v14  ;;  %v1409_v31 = vadd.f32 %v2865_v25, %v1400_v26 }
 0x98d   :  { %v1392_v32 = vmul.f32 %v3303_v29, %v1360_v58  ;;  %v1408_v33 = vadd.f32 %v2865_v25, %v1399_v28 }
 0x98e   :  { %v1402_v34 = vmul.f32 %v2864_v21, %v1393_v30 }
 0x98f   :  { %v1401_v35 = vmul.f32 %v2864_v21, %v1392_v32  ;;  %v1412_v37 = vpack.c.bf16 %v1409_v31, %v1408_v33  ;;  %v2871_v33 = vld [vmem:[%s4393_s4 + $0x17] ss:$0 sm:$0xff] }
 0x990   :  { %v1411_v38 = vadd.f32 %v2865_v25, %v1402_v34 }
 0x991   :  { %3167 = vmatprep.mubr.msk.bf16.mxu0 %vm340_vm2, %v1412_v37  ;;  %v1410_v39 = vadd.f32 %v2865_v25, %v1401_v35  ;;  %v2880_v37 = vld [vmem:[%s4393_s4 + $0x18] ss:$0 sm:$0xff] }
 0x993   :  { %v1413_v40 = vpack.c.bf16 %v1411_v38, %v1410_v39 }
 0x995   :  { %3168 = vmatmul.mubr.msk.bf16.vlgmr.msra.gmra.mrb[12].mxu0 %vm340_vm2, %v1413_v40 }
 0x996   :  { %3172 = vmatpush3.bf16.msra.mxu0 %v3256_v41 }
 0x997   :  { %3173 = vmatprep.subr.bf16.mxu0 %v3257_v44 }
 0x99a   :  { %3174 = vmatpush3.bf16.msra.mxu0 %v3257_v44 }
 0x99b   :  { %3175 = vmatprep.subr.bf16.mxu0 %v3258_v45 }
 0x99e   :  { %3176 = vmatpush3.bf16.msra.mxu0 %v3258_v45 }
 0x99f   :  { %3177 = vmatprep.subr.bf16.mxu0 %v3259_v46 }
 0x9a2   :  { %3178 = vmatpush3.bf16.msra.mxu0 %v3259_v46 }
 0x9a3   :  { %3179 = vmatprep.subr.bf16.mxu0 %v3260_v47 }
 0x9a6   :  { %3180 = vmatpush3.bf16.msra.mxu0 %v3260_v47 }
 0x9a7   :  { %3181 = vmatprep.subr.bf16.mxu0 %v3261_v52 }
 0x9aa   :  { %3182 = vmatpush3.bf16.msra.mxu0 %v3261_v52 }
 0xa68   :  { %v3169_v51 = vpop.f32.mrb[12].mxu0 }
 0xa69   :  { %v1484_v55 = vadd.f32 %v3169_v51, %v2866_v49  ;;  %v1475_v59 = vpop.f32.mrb[13].mxu0 }
 0xa6a   :  { %v1476_v60 = vadd.f32 %v2866_v49, %v1475_v59  ;;  %v3170_v54 = vpop.f32.mrb[14].mxu0 }
 0xa6b   :  { %v1492_v0 = vmul.f32 %v1484_v55, %v1484_v55  ;;  %v1487_v61 = vadd.f32 %v3170_v54, %v2866_v49  ;;  %v1478_v4 = vpop.f32.mrb[15].mxu0 }
 0xa6c   :  { %v1490_v63 = vmul.f32 %v1476_v60, %v1476_v60  ;;  %v1479_v48 = vadd.f32 %v2866_v49, %v1478_v4 }
 0xa6d   :  { %v1496_v7 = vmul.f32 %v1492_v0, %v1484_v55  ;;  %v1493_v14 = vmul.f32 %v1487_v61, %v1487_v61 }
 0xa6e   :  { %v1494_v53 = vmul.f32 %v1490_v63, %v1476_v60  ;;  %v1491_v58 = vmul.f32 %v1479_v48, %v1479_v48 }
 0xa6f   :  { %v1500_v57 = vmul.f32 0.044715, %v1496_v7  ;;  %v1497_v36 = vmul.f32 %v1493_v14, %v1487_v61 }
 0xa70   :  { %v1498_v42 = vmul.f32 0.044715, %v1494_v53  ;;  %v1495_v62 = vmul.f32 %v1491_v58, %v1479_v48 }
 0xa71   :  { %v1504_v1 = vadd.f32 %v1500_v57, %v1484_v55  ;;  %v1501_v2 = vmul.f32 0.044715, %v1497_v36 }
 0xa72   :  { %v1502_v5 = vadd.f32 %v1498_v42, %v1476_v60  ;;  %v1499_v11 = vmul.f32 0.044715, %v1495_v62 }
 0xa73   :  { %v1508_v12 = vmul.f32 0.7978846, %v1504_v1  ;;  %v1505_v3 = vadd.f32 %v1501_v2, %v1487_v61 }
 0xa74   :  { %v1506_v43 = vmul.f32 0.7978846, %v1502_v5  ;;  %v1503_v56 = vadd.f32 %v1499_v11, %v1479_v48 }
 0xa75   :  { %3304 = vtanh.f32 %v1508_v12  ;;  %v1509_v8 = vmul.f32 0.7978846, %v1505_v3 }
 0xa76   :  { %3306 = vtanh.f32 %v1506_v43  ;;  %v1507_v9 = vmul.f32 0.7978846, %v1503_v56  ;;  %v3262_v43 = vld [vmem:[%s4391_s3 + $0xb8] sm:$0xff]   ;;  %v3263_v56 = vld [vmem:[%s4391_s3 + $0xc0] sm:$0xff]  }
 0xa77   :  { %3308 = vtanh.f32 %v1509_v8  ;;  %3187 = vmatprep.subr.bf16.mxu0 %v3262_v43 }
 0xa78   :  { %3310 = vtanh.f32 %v1507_v9 }
 0xa7f   :  { %v3305_v13 = vpop.eup %3304 }
 0xa80   :  { %v3307_v16 = vpop.eup %3306  ;;  %v1516_v17 = vadd.f32 1.0, %v3305_v13 }
 0xa81   :  { %v3309_v18 = vpop.eup %3308  ;;  %v1514_v19 = vadd.f32 1.0, %v3307_v16 }
 0xa82   :  { %v3311_v20 = vpop.eup %3310  ;;  %v1520_v21 = vmul.f32 0.5, %v1516_v17  ;;  %v1517_v22 = vadd.f32 1.0, %v3309_v18 }
 0xa83   :  { %v1518_v23 = vmul.f32 0.5, %v1514_v19  ;;  %v1515_v24 = vadd.f32 1.0, %v3311_v20 }
 0xa84   :  { %v1521_v25 = vmul.f32 0.5, %v1517_v22  ;;  %v1524_v27 = vmul.f32 %v1520_v21, %v1484_v55 }
 0xa85   :  { %v1519_v26 = vmul.f32 0.5, %v1515_v24  ;;  %v1522_v29 = vmul.f32 %v1518_v23, %v1476_v60 }
 0xa86   :  { %v1525_v28 = vmul.f32 %v1521_v25, %v1487_v61 }
 0xa87   :  { %v1523_v30 = vmul.f32 %v1519_v26, %v1479_v48  ;;  %v2881_v26 = vld [vmem:[%s4393_s4 + $0x3] ss:$0 sm:$0xff] }
 0xa88   :  { %v1527_v31 = vpack.c.bf16 %v1525_v28, %v1524_v27 }
 0xa89   :  { %v1526_v32 = vpack.c.bf16 %v1523_v30, %v1522_v29 }
 0xa8b   :  { %3183 = vmatprep.mubr.msk.bf16.mxu0 %vm967_vm3, %v1526_v32  ;;  %v2882_v32 = vld [vmem:[%s4393_s4 + $0x4] ss:$0 sm:$0xff] }
 0xa8c   :  { %3184 = vmatmul.mubr.msk.bf16.vlgmr.msra.gmra.mrb[16].mxu0 %vm967_vm3, %v1527_v31 }
 0xa8d   :  { %3188 = vmatpush3.bf16.msra.mxu0 %v3262_v43 }
 0xa8e   :  { %3189 = vmatprep.subr.bf16.mxu0 %v3263_v56 }
 0xa91   :  { %3190 = vmatpush3.bf16.msra.mxu0 %v3263_v56 }
 0xb5f   :  { %v3185_v34 = vpop.f32.mrb[16].mxu0 }
 0xb60   :  { %v1630_v35 = vadd.f32 %v3185_v34, %v2871_v33  ;;  %v1621_v38 = vpop.f32.mrb[17].mxu0 }
 0xb61   :  { %v1622_v39 = vadd.f32 %v2871_v33, %v1621_v38  ;;  %v3186_v40 = vpop.f32.mrb[18].mxu0 }
 0xb62   :  { %v1633_v41 = vadd.f32 %v3186_v40, %v2871_v33  ;;  %v1624_v44 = vpop.f32.mrb[19].mxu0  ;;  %v1643_v45 = vmul.f32 %v2880_v37, %v1630_v35 }
 0xb63   :  { %v1641_v46 = vmul.f32 %v2880_v37, %v1622_v39  ;;  %v1625_v47 = vadd.f32 %v2871_v33, %v1624_v44 }
 0xb64   :  { %v1644_v52 = vmul.f32 %v2880_v37, %v1633_v41  ;;  %v1647_v60 = vadd.f32 %v1643_v45, %v3833_v6 }
 0xb65   :  { %v1642_v49 = vmul.f32 %v2880_v37, %v1625_v47  ;;  %v1645_v51 = vadd.f32 %v1641_v46, %v3822_v10 }
 0xb66   :  { %v1648_v0 = vadd.f32 %v1644_v52, %v3828_v15  ;;  %v1655_v61 = vsel %vm340_vm2, %v1647_v60, 0.0  ;;  %v2883_v52 = vld [vmem:[%s4393_s4 + $0x5] ss:$0 sm:$0xff]  ;;  %s3356_s4 = smov 40  }
 0xb67   :  { %v1649_v55 = vsel %vm340_vm2, %v1645_v51, 0.0  ;;  %v1646_v59 = vadd.f32 %v1642_v49, %v3825_v50 }
 0xb68   :  { %1650 = vadd.xlane.f32.xlu1 %v1649_v55  ;;  %v1658_v4 = vsel %vm340_vm2, %v1648_v0, 0.0 }
 0xb69   :  { %v1652_v54 = vsel %vm340_vm2, %v1646_v59, 0.0 }
 0xb6a   :  { %1653 = vadd.xlane.f32.xlu0 %v1652_v54 }
 0xb6c   :  { %1656 = vadd.xlane.f32.xlu1 %v1655_v61 }
 0xb6e   :  { %1659 = vadd.xlane.f32.xlu0 %v1658_v4 }
 0xbf5   :  { %v1651_v63 = vpop.xlane.xlu1 %1650 }
 0xbf6   :  { %v1661_v10 = vmul.f32 0.03125, %v1651_v63 }
 0xbf7   :  { %v1654_v48 = vpop.xlane.xlu0 %1653 }
 0xbf8   :  { %v1665_v7 = vsub.f32 %v1645_v51, %v1661_v10  ;;  %v1662_v14 = vmul.f32 0.03125, %v1654_v48 }
 0xbf9   :  { %v1657_v50 = vpop.xlane.xlu1 %1656 }
 0xbfa   :  { %v1666_v53 = vsub.f32 %v1646_v59, %v1662_v14  ;;  %v1663_v6 = vmul.f32 0.03125, %v1657_v50  ;;  %v1669_v58 = vmul.f32 %v1665_v7, %v1665_v7 }
 0xbfb   :  { %v1660_v57 = vpop.xlane.xlu0 %1659 }
 0xbfc   :  { %v1667_v36 = vsub.f32 %v1647_v60, %v1663_v6  ;;  %v1664_v42 = vmul.f32 0.03125, %v1660_v57  ;;  %v1673_v15 = vsel %vm340_vm2, %v1669_v58, 0.0  ;;  %v1670_v62 = vmul.f32 %v1666_v53, %v1666_v53 }
 0xbfd   :  { %1674 = vadd.xlane.f32.xlu1 %v1673_v15 }
 0xbfe   :  { %v1668_v1 = vsub.f32 %v1648_v0, %v1664_v42  ;;  %v1676_v2 = vsel %vm340_vm2, %v1670_v62, 0.0  ;;  %v1671_v5 = vmul.f32 %v1667_v36, %v1667_v36 }
 0xbff   :  { %1677 = vadd.xlane.f32.xlu0 %v1676_v2 }
 0xc00   :  { %v1679_v11 = vsel %vm340_vm2, %v1671_v5, 0.0  ;;  %v1672_v12 = vmul.f32 %v1668_v1, %v1668_v1 }
 0xc01   :  { %1680 = vadd.xlane.f32.xlu1 %v1679_v11 }
 0xc02   :  { %v1682_v3 = vsel %vm340_vm2, %v1672_v12, 0.0 }
 0xc03   :  { %1683 = vadd.xlane.f32.xlu0 %v1682_v3 }
 0xc8a   :  { %v1675_v8 = vpop.xlane.xlu1 %1674 }
 0xc8b   :  { %v1685_v9 = vmul.f32 0.03125, %v1675_v8 }
 0xc8c   :  { %v1678_v13 = vpop.xlane.xlu0 %1677 }
 0xc8d   :  { %v1689_v16 = vadd.f32 1e-06, %v1685_v9  ;;  %v1686_v17 = vmul.f32 0.03125, %v1678_v13 }
 0xc8e   :  { %v1681_v18 = vpop.xlane.xlu1 %1680 }
 0xc8f   :  { %3312 = vrsqrt.f32 %v1689_v16  ;;  %v1690_v19 = vadd.f32 1e-06, %v1686_v17  ;;  %v1687_v20 = vmul.f32 0.03125, %v1681_v18 }
 0xc90   :  { %v1684_v21 = vpop.xlane.xlu0 %1683 }
 0xc91   :  { %3314 = vrsqrt.f32 %v1690_v19  ;;  %v1691_v22 = vadd.f32 1e-06, %v1687_v20  ;;  %v1688_v23 = vmul.f32 0.03125, %v1684_v21 }
 0xc93   :  { %3316 = vrsqrt.f32 %v1691_v22  ;;  %v1692_v24 = vadd.f32 1e-06, %v1688_v23  ;;  %v3350_v22 = vmov 683565275  }
 0xc95   :  { %3318 = vrsqrt.f32 %v1692_v24 }
 0xc99   :  { %v3313_v25 = vpop.eup %3312 }
 0xc9a   :  { %v1697_v27 = vmul.f32 %v3313_v25, %v1665_v7  ;;  %v3351_v25 = vmov 2475754826  }
 0xc9b   :  { %v3315_v28 = vpop.eup %3314 }
 0xc9c   :  { %v1698_v29 = vmul.f32 %v3315_v28, %v1666_v53  ;;  %v1706_v30 = vmul.f32 %v2881_v26, %v1697_v27  ;;  %v3352_v28 = vmov 2131351028  }
 0xc9d   :  { %v3317_v31 = vpop.eup %3316 }
 0xc9e   :  { %v1699_v33 = vmul.f32 %v3317_v31, %v1667_v36  ;;  %v1707_v34 = vmul.f32 %v2881_v26, %v1698_v29  ;;  %v1715_v39 = vadd.f32 %v2882_v32, %v1706_v30  ;;  %v3353_v31 = vmov 2102212464  }
 0xc9f   :  { %v3319_v35 = vpop.eup %3318 }
 0xca0   :  { %v1708_v37 = vmul.f32 %v2881_v26, %v1699_v33  ;;  %v1700_v38 = vmul.f32 %v3319_v35, %v1668_v1  ;;  %v1716_v40 = vadd.f32 %v2882_v32, %v1707_v34  ;;  %v3354_v34 = vmov 920167782  }
 0xca2   :  { %v1709_v41 = vmul.f32 %v2881_v26, %v1700_v38  ;;  %v1719_v44 = vpack.c.bf16 %v1716_v40, %v1715_v39  ;;  %v1717_v45 = vadd.f32 %v2882_v32, %v1708_v37  ;;  %v3355_v40 = vmov 1326507024  }
 0xca4   :  { %3191 = vmatprep.mubr.msk.bf16.mxu0 %vm340_vm2, %v1719_v44  ;;  %v1718_v46 = vadd.f32 %v2882_v32, %v1709_v41 }
 0xca6   :  { %v1720_v47 = vpack.c.bf16 %v1718_v46, %v1717_v45 }
 0xca8   :  { %3192 = vmatmul.mubr.msk.bf16.vlgmr.msra.gmra.mrb[20].mxu0 %vm340_vm2, %v1720_v47 }
 0xd7b   :  { %v3193_v49 = vpop.f32.mrb[20].mxu0 }
 0xd7c   :  { %v3995_v51 = vadd.f32 %v3193_v49, %v2883_v52  ;;  %v1782_v55 = vpop.f32.mrb[21].mxu0 }
 0xd7d   :  { %v3997_v59 = vadd.f32 %v2883_v52, %v1782_v55  ;;  %v3194_v60 = vpop.f32.mrb[22].mxu0 }
 0xd7e   :  { %v2034_v54 = vand.u32 2139095040, %v3995_v51  ;;  %v4000_v0 = vadd.f32 %v3194_v60, %v2883_v52  ;;  %1805 = vrot.lane.b32.xlu1 %v3995_v51, %s3349_s19  ;;  %v1785_v61 = vpop.f32.mrb[23].mxu0  ;;  %v2031_v4 = vand.u32 2147483647, %v3995_v51 }
 0xd7f   :  { %v1828_v63 = vand.u32 2139095040, %v3997_v59  ;;  %v4005_v10 = vadd.f32 %v2883_v52, %v1785_v61  ;;  %v1825_v9 = vand.u32 2147483647, %v3997_v59 }
 0xd80   :  { %v2035_v48 = vshrl.u32 %v2034_v54, 23  ;;  %v2137_v7 = vand.u32 2139095040, %v4000_v0  ;;  %v2038_v53 = vand.u32 8388607, %v2031_v4  ;;  %v2134_v6 = vand.u32 2147483647, %v4000_v0 }
 0xd81   :  { %v1829_v14 = vshrl.u32 %v1828_v63, 23  ;;  %v1931_v50 = vand.u32 2139095040, %v4005_v10  ;;  %1803 = vrot.lane.b32.xlu0 %v4005_v10, %s3349_s19 }
 0xd82   :  { %v2896_v58 = vadd.s32 4294967169, %v2035_v48  ;;  %v2138_v57 = vshrl.u32 %v2137_v7, 23  ;;  %1801 = vrot.lane.b32.xlu1 %v3997_v59, %s3349_s19  ;;  %v2141_v15 = vand.u32 8388607, %v2134_v6  ;;  %v2039_v5 = vor.u32 8388608, %v2038_v53 }
 0xd83   :  { %v2888_v36 = vadd.s32 4294967169, %v1829_v14  ;;  %v1932_v42 = vshrl.u32 %v1931_v50, 23 }
 0xd84   :  { %v2041_v62 = vadd.s32 1, %v2896_v58  ;;  %v2900_v1 = vadd.s32 4294967169, %v2138_v57  ;;  %v2142_v3 = vor.u32 8388608, %v2141_v15  ;;  %v4020_v17 = vshll.u32 %v2039_v5, 8 }
 0xd85   :  { %v1835_v2 = vadd.s32 1, %v2888_v36  ;;  %v2892_v12 = vadd.s32 4294967169, %v1932_v42 }
 0xd86   :  { %vm2042_vm4 = vcmp.gt.s32.totalorder %v2041_v62, 0  ;;  %v2144_v11 = vadd.s32 1, %v2900_v1  ;;  %1807 = vrot.lane.b32.xlu1 %v4000_v0, %s3349_s19  ;;  %v4022_v18 = vshll.u32 %v2142_v3, 8 }
 0xd87   :  { %v2043_v43 = vsel %vm2042_vm4, %v2041_v62, 0  ;;  %vm1836_vm5 = vcmp.gt.s32.totalorder %v1835_v2, 0  ;;  %v4018_v13 = vadd.s32 1, %v2892_v12  ;;  %vm2033_vm4 = vcmp.lt.s32.totalorder %v3995_v51, 0 }
 0xd88   :  { %v2045_v56 = vand.u32 31, %v2043_v43  ;;  %vm2145_vm6 = vcmp.gt.s32.totalorder %v2144_v11, 0  ;;  %v2044_v19 = vshrl.u32 %v2043_v43, 5  ;;  %v4024_v20 = vsel %vm1836_vm5, %v1835_v2, 0 }
 0xd89   :  { %v2146_v8 = vsel %vm2145_vm6, %v2144_v11, 0  ;;  %vm1939_vm12 = vcmp.gt.s32.totalorder %v4018_v13, 0 }
 0xd8a   :  { %v2046_v16 = vsub.s32 32, %v2045_v56  ;;  %v2148_v21 = vand.u32 31, %v2146_v8  ;;  %v2048_v23 = vshll.u32 %v3350_v22, %v2045_v56  ;;  %v2051_v27 = vshll.u32 %v3351_v25, %v2045_v56 }
 0xd8b   :  { %v2054_v30 = vshll.u32 %v3352_v28, %v2045_v56  ;;  %v2057_v33 = vshll.u32 %v3353_v31, %v2045_v56  ;;  %v2060_v39 = vshll.u32 %v3354_v34, %v2045_v56  ;;  %vm2063_vm7 = vcmp.lt.s32.totalorder %v2044_v19, 1 }
 0xd8c   :  { %v2047_v24 = vshrl.u32 %v3350_v22, %v2046_v16  ;;  %v2049_v26 = vshrl.u32 %v3351_v25, %v2046_v16  ;;  %v2052_v29 = vshrl.u32 %v3352_v28, %v2046_v16  ;;  %v2055_v32 = vshrl.u32 %v3353_v31, %v2046_v16 }
 0xd8d   :  { %v2058_v35 = vshrl.u32 %v3354_v34, %v2046_v16  ;;  %v2061_v41 = vshrl.u32 %v3355_v40, %v2046_v16  ;;  %vm2065_vm8 = vcmp.lt.s32.totalorder %v2044_v19, 3  ;;  %vm2066_vm9 = vcmp.lt.s32.totalorder %v2044_v19, 4 }
 0xd8e   :  { %v2050_v37 = vor.u32 %v2049_v26, %v2048_v23  ;;  %v2053_v38 = vor.u32 %v2052_v29, %v2051_v27  ;;  %v2056_v44 = vor.u32 %v2055_v32, %v2054_v30  ;;  %v2149_v54 = vsub.s32 32, %v2148_v21 }
 0xd8f   :  { %v2059_v45 = vor.u32 %v2058_v35, %v2057_v33  ;;  %v2062_v46 = vor.u32 %v2061_v41, %v2060_v39  ;;  %vm2064_vm10 = vcmp.lt.s32.totalorder %v2044_v19, 2  ;;  %v2147_v7 = vshrl.u32 %v2146_v8, 5 }
 0xd90   :  { %v2067_v47 = vsel %vm2063_vm7, %v2047_v24, %v2050_v37  ;;  %v2071_v52 = vsel %vm2063_vm7, %v2050_v37, %v2053_v38  ;;  %v2068_v49 = vsel %vm2066_vm9, %v2056_v44, 2102212464  ;;  %v2075_v60 = vsel %vm2063_vm7, %v2053_v38, %v2056_v44 }
 0xd91   :  { %v2072_v55 = vsel %vm2066_vm9, %v2059_v45, 920167782  ;;  %v2069_v61 = vsel %vm2065_vm8, %v2053_v38, %v2068_v49  ;;  %v2076_v48 = vsel %vm2066_vm9, %v2062_v46, 1326507024  ;;  %v2151_v53 = vshll.u32 %v3350_v22, %v2148_v21 }
 0xd92   :  { %v2073_v63 = vsel %vm2065_vm8, %v2056_v44, %v2072_v55  ;;  %v2077_v50 = vsel %vm2065_vm8, %v2059_v45, %v2076_v48  ;;  %v2070_v58 = vsel %vm2064_vm10, %v2067_v47, %v2069_v61  ;;  %v2152_v1 = vshrl.u32 %v3351_v25, %v2149_v54 }
 0xd93   :  { %v2074_v14 = vsel %vm2064_vm10, %v2071_v52, %v2073_v63  ;;  %v2078_v57 = vsel %vm2064_vm10, %v2075_v60, %v2077_v50  ;;  %v2154_v2 = vshll.u32 %v3351_v25, %v2148_v21  ;;  %v2155_v5 = vshrl.u32 %v3352_v28, %v2149_v54 }
 0xd94   :  { %v4039_v36 = vmul.u32.u64.low %v4020_v17, %v2074_v14  ;;  %v4040_v42 = vmul.u32.u64.high %v4020_v17, %v2074_v14, %v4039_v36  ;;  %v4044_v15 = vmul.u32.u64.low %v4020_v17, %v2078_v57  ;;  %v4045_v62 = vmul.u32.u64.high %v4020_v17, %v2078_v57, %v4044_v15 }
 0xd95   :  { %v2157_v11 = vshll.u32 %v3352_v28, %v2148_v21  ;;  %v2158_v12 = vshrl.u32 %v3353_v31, %v2149_v54  ;;  %v2160_v3 = vshll.u32 %v3353_v31, %v2148_v21  ;;  %v2153_v43 = vor.u32 %v2152_v1, %v2151_v53 }
 0xd96   :  { %v2161_v56 = vshrl.u32 %v3354_v34, %v2149_v54  ;;  %v2163_v8 = vshll.u32 %v3354_v34, %v2148_v21  ;;  %v2164_v16 = vshrl.u32 %v3355_v40, %v2149_v54  ;;  %v1839_v19 = vand.u32 31, %v4024_v20 }
 0xd97   :  { %v2089_v23 = vadd.s32 1, %v4040_v42  ;;  %v2156_v24 = vor.u32 %v2155_v5, %v2154_v2  ;;  %v2159_v26 = vor.u32 %v2158_v12, %v2157_v11  ;;  %v2086_v27 = vmul.u32 %v4020_v17, %v2070_v58 }
 0xd98   :  { %vm2088_vm11 = vc.u32 %v4045_v62, %v4039_v36  ;;  %v2162_v29 = vor.u32 %v2161_v56, %v2160_v3  ;;  %v2165_v30 = vor.u32 %v2164_v16, %v2163_v8  ;;  %vm2166_vm13 = vcmp.lt.s32.totalorder %v2147_v7, 1 }
 0xd99   :  { %v2090_v32 = vsel %vm2088_vm11, %v2089_v23, %v4040_v42  ;;  %vm2169_vm14 = vcmp.lt.s32.totalorder %v2147_v7, 4  ;;  %v2150_v33 = vshrl.u32 %v3350_v22, %v2149_v54  ;;  %v2174_v37 = vsel %vm2166_vm13, %v2153_v43, %v2156_v24 }
 0xd9a   :  { %v2091_v21 = vadd.s32 %v2090_v32, %v2086_v27  ;;  %v2171_v35 = vsel %vm2169_vm14, %v2159_v26, 2102212464  ;;  %vm2168_vm15 = vcmp.lt.s32.totalorder %v2147_v7, 3  ;;  %v2175_v38 = vsel %vm2169_vm14, %v2162_v29, 920167782 }
 0xd9b   :  { %v2178_v39 = vsel %vm2166_vm13, %v2156_v24, %v2159_v26  ;;  %v2179_v17 = vsel %vm2169_vm14, %v2165_v30, 1326507024  ;;  %vm2167_vm0 = vcmp.lt.s32.totalorder %v2147_v7, 2  ;;  %v2176_v44 = vsel %vm2168_vm15, %v2159_v26, %v2175_v38 }
 0xd9c   :  { %v2092_v41 = vadd.s32 536870912, %v2091_v21  ;;  %v2180_v45 = vsel %vm2168_vm15, %v2162_v29, %v2179_v17  ;;  %v2170_v46 = vsel %vm2166_vm13, %v2150_v33, %v2153_v43  ;;  %v2172_v47 = vsel %vm2168_vm15, %v2156_v24, %v2171_v35 }
 0xd9d   :  { %v2177_v52 = vsel %vm2167_vm0, %v2174_v37, %v2176_v44  ;;  %v2181_v49 = vsel %vm2167_vm0, %v2178_v39, %v2180_v45  ;;  %v1840_v54 = vsub.s32 32, %v1839_v19  ;;  %v2173_v14 = vsel %vm2167_vm0, %v2170_v46, %v2172_v47 }
 0xd9e   :  { %v4064_v55 = vshrl.u32 %v2092_v41, 30  ;;  %v4067_v60 = vmul.u32.u64.low %v4022_v18, %v2181_v49  ;;  %v4068_v61 = vmul.u32.u64.high %v4022_v18, %v2181_v49, %v4067_v60  ;;  %v4077_v50 = vshrl.u32 %v4024_v20, 5 }
 0xd9f   :  { %v4071_v63 = vmul.u32.u64.low %v4022_v18, %v2177_v52  ;;  %v4072_v48 = vmul.u32.u64.high %v4022_v18, %v2177_v52, %v4071_v63  ;;  %v4082_v53 = vsel %vm1939_vm12, %v4018_v13, 0  ;;  %v1832_v58 = vand.u32 8388607, %v1825_v9 }
 0xda0   :  { %v2094_v7 = vshll.u32 %v4064_v55, 30  ;;  %v1846_v42 = vshrl.u32 %v3352_v28, %v1840_v54  ;;  %v1849_v15 = vshrl.u32 %v3353_v31, %v1840_v54  ;;  %v2189_v20 = vmul.u32 %v4022_v18, %v2173_v14 }
 0xda1   :  { %vm2191_vm3 = vc.u32 %v4068_v61, %v4071_v63  ;;  %v2192_v1 = vadd.s32 1, %v4072_v48  ;;  %v1842_v2 = vshll.u32 %v3350_v22, %v1839_v19  ;;  %v1843_v13 = vshrl.u32 %v3351_v25, %v1840_v54 }
 0xda2   :  { %v4086_v57 = vsub.s32 %v2091_v21, %v2094_v7  ;;  %v1845_v11 = vshll.u32 %v3351_v25, %v1839_v19  ;;  %v1848_v12 = vshll.u32 %v3352_v28, %v1839_v19  ;;  %v1852_v3 = vshrl.u32 %v3354_v34, %v1840_v54 }
 0xda3   :  { %v2193_v43 = vsel %vm2191_vm3, %v2192_v1, %v4072_v48  ;;  %v1851_v56 = vshll.u32 %v3353_v31, %v1839_v19  ;;  %v1854_v18 = vshll.u32 %v3354_v34, %v1839_v19  ;;  %v1855_v8 = vshrl.u32 %v3355_v40, %v1840_v54 }
 0xda4   :  { %v2097_v5 = vsub.s32 0, %v4086_v57  ;;  %v1847_v23 = vor.u32 %v1846_v42, %v1845_v11  ;;  %v1850_v24 = vor.u32 %v1849_v15, %v1848_v12  ;;  %v2194_v26 = vadd.s32 %v2193_v43, %v2189_v20 }
 0xda5   :  { %v1844_v27 = vor.u32 %v1843_v13, %v1842_v2  ;;  %v1853_v29 = vor.u32 %v1852_v3, %v1851_v56  ;;  %v1856_v30 = vor.u32 %v1855_v8, %v1854_v18  ;;  %v4106_v32 = vand.u32 31, %v4082_v53 }
 0xda6   :  { %v2897_v16 = vmin.u32 %v2097_v5, %v4086_v57  ;;  %v1833_v33 = vor.u32 8388608, %v1832_v58  ;;  %vm1860_vm5 = vcmp.lt.s32.totalorder %v4077_v50, 4  ;;  %v2117_v19 = vsub.s32 4, %v4064_v55 }
 0xda7   :  { %v2195_v35 = vadd.s32 536870912, %v2194_v26  ;;  %vm1857_vm6 = vcmp.lt.s32.totalorder %v4077_v50, 1  ;;  %v1866_v37 = vsel %vm1860_vm5, %v1853_v29, 920167782  ;;  %v1841_v39 = vshrl.u32 %v3350_v22, %v1840_v54 }
 0xda8   :  { %v2099_v21 = vclz %v2897_v16  ;;  %vm1859_vm7 = vcmp.lt.s32.totalorder %v4077_v50, 3  ;;  %v1869_v17 = vsel %vm1857_vm6, %v1847_v23, %v1850_v24  ;;  %v1865_v44 = vsel %vm1857_vm6, %v1844_v27, %v1847_v23 }
 0xda9   :  { %v4116_v41 = vshrl.u32 %v2195_v35, 30  ;;  %v1867_v45 = vsel %vm1859_vm7, %v1850_v24, %v1866_v37  ;;  %v1870_v46 = vsel %vm1860_vm5, %v1856_v30, 1326507024  ;;  %vm1858_vm9 = vcmp.lt.s32.totalorder %v4077_v50, 2 }
 0xdaa   :  { %v2898_v38 = vadd.s32 4294967294, %v2099_v21  ;;  %v1862_v47 = vsel %vm1860_vm5, %v1850_v24, 2102212464  ;;  %v1871_v52 = vsel %vm1859_vm7, %v1853_v29, %v1870_v46  ;;  %v1873_v48 = vshll.u32 %v1833_v33, 8 }
 0xdab   :  { %v2197_v60 = vshll.u32 %v4116_v41, 30  ;;  %v1872_v54 = vsel %vm1858_vm9, %v1869_v17, %v1871_v52  ;;  %v2087_v7 = vadd.s32 %v4039_v36, %v4045_v62  ;;  %v1868_v42 = vsel %vm1858_vm9, %v1865_v44, %v1867_v45 }
 0xdac   :  { %vm2899_vm8 = vcmp.lt.s32.totalorder %v2898_v38, 0  ;;  %v1861_v20 = vsel %vm1857_vm6, %v1841_v39, %v1844_v27  ;;  %v4134_v1 = vmul.u32.u64.low %v1873_v48, %v1872_v54  ;;  %v4135_v2 = vmul.u32.u64.high %v1873_v48, %v1872_v54, %v4134_v1 }
 0xdad   :  { %v2102_v49 = vsel %vm2899_vm8, 0, %v2898_v38  ;;  %v2198_v15 = vsub.s32 %v2194_v26, %v2197_v60  ;;  %v1863_v12 = vsel %vm1859_vm7, %v1847_v23, %v1862_v47  ;;  %v2118_v36 = vsel %vm2033_vm4, %v2117_v19, %v4064_v55 }
 0xdae   :  { %v2103_v14 = vsub.s32 32, %v2102_v49  ;;  %v2107_v58 = vsub.s32 4294967266, %v2102_v49  ;;  %v2104_v13 = vshll.u32 %v4086_v57, %v2102_v49  ;;  %vm4149_vm10 = vcmp.le.f32.partialorder %v2031_v4, 0.7853982 }
 0xdaf   :  { %v2200_v62 = vsub.s32 0, %v2198_v15  ;;  %v4143_v3 = vmul.u32.u64.low %v1873_v48, %v1868_v42  ;;  %v4144_v43 = vmul.u32.u64.high %v1873_v48, %v1868_v42, %v4143_v3  ;;  %v1864_v16 = vsel %vm1858_vm9, %v1861_v20, %v1863_v12 }
 0xdb0   :  { %v2105_v5 = vshrl.u32 %v2087_v7, %v2103_v14  ;;  %v2108_v11 = vadd.s32 127, %v2107_v58  ;;  %v4157_v55 = vsel %vm4149_vm10, 0, %v2118_v36  ;;  %v1928_v24 = vand.u32 2147483647, %v4005_v10 }
 0xdb1   :  { %v2901_v8 = vmin.u32 %v2200_v62, %v2198_v15  ;;  %vm1882_vm11 = vc.u32 %v4135_v2, %v4143_v3  ;;  %v1883_v4 = vadd.s32 1, %v4144_v43  ;;  %v1943_v27 = vsub.s32 32, %v4106_v32 }
 0xdb2   :  { %v2106_v56 = vor.u32 %v2105_v5, %v2104_v13  ;;  %v2109_v18 = vshll.u32 %v2108_v11, 23  ;;  %v4165_v29 = vshrl.u32 %v4082_v53, 5  ;;  %v1880_v21 = vmul.u32 %v1873_v48, %v1864_v16 }
 0xdb3   :  { %v2202_v26 = vclz %v2901_v8  ;;  %v4168_v33 = vand.u32 3, %v4157_v55  ;;  %v2190_v19 = vadd.s32 %v4071_v63, %v4068_v61  ;;  %v1884_v37 = vsel %vm1882_vm11, %v1883_v4, %v4144_v43 }
 0xdb4   :  { %v2110_v23 = vor.u32 4788187, %v2109_v18  ;;  %v2113_v30 = vcvt.s32.f32 %v2106_v56  ;;  %v1885_v39 = vadd.s32 %v1884_v37, %v1880_v21  ;;  %v1935_v17 = vand.u32 8388607, %v1928_v24 }
 0xdb5   :  { %v2902_v35 = vadd.s32 4294967294, %v2202_v26  ;;  %v1946_v53 = vshrl.u32 %v3351_v25, %v1943_v27  ;;  %v1945_v44 = vshll.u32 %v3350_v22, %v4106_v32  ;;  %v1948_v45 = vshll.u32 %v3351_v25, %v4106_v32 }
 0xdb6   :  { %v2111_v50 = vand.u32 2147483647, %v2110_v23  ;;  %v1951_v61 = vshll.u32 %v3352_v28, %v4106_v32  ;;  %v1886_v47 = vadd.s32 536870912, %v1885_v39  ;;  %v1949_v52 = vshrl.u32 %v3352_v28, %v1943_v27 }
 0xdb7   :  { %vm2903_vm12 = vcmp.lt.s32.totalorder %v2902_v35, 0  ;;  %v1952_v54 = vshrl.u32 %v3353_v31, %v1943_v27  ;;  %v1955_v48 = vshrl.u32 %v3354_v34, %v1943_v27  ;;  %v1947_v25 = vor.u32 %v1946_v53, %v1945_v44 }
 0xdb8   :  { %v2114_v38 = vmul.f32 %v2113_v30, %v2111_v50  ;;  %v2205_v46 = vsel %vm2903_vm12, 0, %v2902_v35  ;;  %v4187_v14 = vshrl.u32 %v1886_v47, 30  ;;  %v1954_v58 = vshll.u32 %v3353_v31, %v4106_v32 }
 0xdb9   :  { %v2206_v49 = vsub.s32 32, %v2205_v46  ;;  %v2210_v60 = vsub.s32 4294967266, %v2205_v46  ;;  %v2207_v28 = vshll.u32 %v2198_v15, %v2205_v46  ;;  %v1950_v5 = vor.u32 %v1949_v52, %v1948_v45 }
 0xdba   :  { %v2115_v63 = vxor.u32 2147483648, %v2114_v38  ;;  %v1888_v13 = vshll.u32 %v4187_v14, 30  ;;  %v1958_v11 = vshrl.u32 %v3355_v40, %v1943_v27  ;;  %v1956_v62 = vor.u32 %v1955_v48, %v1954_v58 }
 0xdbb   :  { %v2208_v20 = vshrl.u32 %v2190_v19, %v2206_v49  ;;  %v2211_v1 = vadd.s32 127, %v2210_v60  ;;  %vm2136_vm13 = vcmp.lt.s32.totalorder %v4000_v0, 0  ;;  %v1953_v43 = vor.u32 %v1952_v54, %v1951_v61 }
 0xdbc   :  { %v2116_v7 = vsel %vm2033_vm4, %v2115_v63, %v2114_v38  ;;  %v4197_v31 = vsub.s32 %v1885_v39, %v1888_v13  ;;  %v1957_v15 = vshll.u32 %v3354_v34, %v4106_v32  ;;  %vm4203_vm14 = vcmp.le.f32.partialorder %v2134_v6, 0.7853982 }
 0xdbd   :  { %v2119_v42 = vsel %vm4149_vm10, %v3995_v51, %v2116_v7  ;;  %v2209_v12 = vor.u32 %v2208_v20, %v2207_v28  ;;  %v2212_v36 = vshll.u32 %v2211_v1, 23  ;;  %v2220_v40 = vsub.s32 4, %v4116_v41 }
 0xdbe   :  { %3320 = vcosq.f32 %v2119_v42  ;;  %v1936_v57 = vor.u32 8388608, %v1935_v17  ;;  %v1891_v8 = vsub.s32 0, %v4197_v31  ;;  %v1959_v16 = vor.u32 %v1958_v11, %v1957_v15 }
 0xdbf   :  { %3322 = vsinq.f32 %v2119_v42  ;;  %v2213_v18 = vor.u32 4788187, %v2212_v36  ;;  %vm1960_vm15 = vcmp.lt.s32.totalorder %v4165_v29, 1  ;;  %vm1963_vm0 = vcmp.lt.s32.totalorder %v4165_v29, 4 }
 0xdc0   :  { %vm2126_vm3 = vcmp.eq.s32.totalorder %v4168_v33, 0  ;;  %v2216_v32 = vcvt.s32.f32 %v2209_v12  ;;  %v1968_v6 = vsel %vm1960_vm15, %v1947_v25, %v1950_v5  ;;  %v1969_v23 = vsel %vm1963_vm0, %v1956_v62, 920167782 }
 0xdc1   :  { %v2214_v34 = vand.u32 2147483647, %v2213_v18  ;;  %vm2125_vm4 = vcmp.lt.s32.totalorder %v4168_v33, 2  ;;  %v2889_v26 = vmin.u32 %v1891_v8, %v4197_v31  ;;  %v1944_v4 = vshrl.u32 %v3350_v22, %v1943_v27 }
 0xdc2   :  { %vm1962_vm5 = vcmp.lt.s32.totalorder %v4165_v29, 3  ;;  %v1965_v50 = vsel %vm1963_vm0, %v1953_v43, 2102212464  ;;  %vm2123_vm6 = vweird.f32 %v3995_v51  ;;  %vm1961_vm7 = vcmp.lt.s32.totalorder %v4165_v29, 2 }
 0xdc3   :  { %v2217_v30 = vmul.f32 %v2216_v32, %v2214_v34  ;;  %v1970_v21 = vsel %vm1962_vm5, %v1953_v43, %v1969_v23  ;;  %v1972_v19 = vsel %vm1960_vm15, %v1950_v5, %v1953_v43  ;;  %v1893_v35 = vclz %v2889_v26 }
 0xdc4   :  { %v1971_v37 = vsel %vm1961_vm7, %v1968_v6, %v1970_v21  ;;  %v1973_v22 = vsel %vm1963_vm0, %v1959_v16, 1326507024  ;;  %v1976_v27 = vshll.u32 %v1936_v57, 8  ;;  %v1964_v39 = vsel %vm1960_vm15, %v1944_v4, %v1947_v25 }
 0xdc5   :  { %v2218_v38 = vxor.u32 2147483648, %v2217_v30  ;;  %v1966_v17 = vsel %vm1962_vm5, %v1950_v5, %v1965_v50  ;;  %v1974_v53 = vsel %vm1962_vm5, %v1956_v62, %v1973_v22  ;;  %v2890_v45 = vadd.s32 4294967294, %v1893_v35 }
 0xdc6   :  { %v1975_v61 = vsel %vm1961_vm7, %v1972_v19, %v1974_v53  ;;  %v4236_v63 = vmul.u32.u64.low %v1976_v27, %v1971_v37  ;;  %v4237_v46 = vmul.u32.u64.high %v1976_v27, %v1971_v37, %v4236_v63  ;;  %vm2129_vm8 = vcmp.eq.s32.totalorder %v4168_v33, 2 }
 0xdc7   :  { %v2219_v49 = vsel %vm2136_vm13, %v2218_v38, %v2217_v30  ;;  %v4245_v60 = vmul.u32.u64.low %v1976_v27, %v1975_v61  ;;  %v4246_v54 = vmul.u32.u64.high %v1976_v27, %v1975_v61, %v4245_v60  ;;  %vm2891_vm9 = vcmp.lt.s32.totalorder %v2890_v45, 0 }
 0xdc8   :  { %v4232_v44 = vpop.eup %3320  ;;  %v2222_v7 = vsel %vm4203_vm14, %v4000_v0, %v2219_v49  ;;  %v1881_v58 = vadd.s32 %v4143_v3, %v4135_v2  ;;  %v1896_v42 = vsel %vm2891_vm9, 0, %v2890_v45  ;;  %v1967_v1 = vsel %vm1961_vm7, %v1964_v39, %v1966_v17 }
 0xdc9   :  { %v4240_v47 = vpop.eup %3322  ;;  %v2130_v52 = vxor.u32 2147483648, %v4232_v44  ;;  %3324 = vcosq.f32 %v2222_v7  ;;  %v1897_v20 = vsub.s32 32, %v1896_v42  ;;  %v2221_v5 = vsel %vm2136_vm13, %v2220_v40, %v4116_v41 }
 0xdca   :  { %v2127_v48 = vxor.u32 2147483648, %v4240_v47  ;;  %3326 = vsinq.f32 %v2222_v7  ;;  %v1901_v2 = vsub.s32 4294967266, %v1896_v42  ;;  %vm1985_vm10 = vc.u32 %v4246_v54, %v4236_v63 }
 0xdcb   :  { %v2131_v25 = vsel %vm2129_vm8, %v2130_v52, %v4240_v47  ;;  %v1899_v11 = vshrl.u32 %v1881_v58, %v1897_v20  ;;  %v1986_v12 = vadd.s32 1, %v4237_v46  ;;  %v1898_v29 = vshll.u32 %v4197_v31, %v1896_v42 }
 0xdcc   :  { %v2128_v28 = vsel %vm2126_vm3, %v4232_v44, %v2127_v48  ;;  %v1902_v33 = vadd.s32 127, %v1901_v2  ;;  %v1983_v36 = vmul.u32 %v1976_v27, %v1967_v1  ;;  %v4279_v41 = vsel %vm4203_vm14, 0, %v2221_v5 }
 0xdcd   :  { %v2132_v13 = vsel %vm2125_vm4, %v2128_v28, %v2131_v25  ;;  %v1987_v62 = vsel %vm1985_vm10, %v1986_v12, %v4237_v46  ;;  %v1900_v43 = vor.u32 %v1899_v11, %v1898_v29  ;;  %v2227_v40 = vand.u32 3, %v4279_v41 }
 0xdce   :  { %v2133_v3 = vsel %vm2123_vm6, nan, %v2132_v13  ;;  %v1903_v15 = vshll.u32 %v1902_v33, 23  ;;  %v1988_v18 = vadd.s32 %v1987_v62, %v1983_v36  ;;  %v1911_v30 = vsub.s32 4, %v4187_v14 }
 0xdcf   :  { %2245 = vrot.lane.b32.xlu0 %v2133_v3, %s3356_s4  ;;  %v1907_v32 = vcvt.s32.f32 %v1900_v43  ;;  %vm2232_vm11 = vcmp.eq.s32.totalorder %v2227_v40, 2  ;;  %vm2229_vm12 = vcmp.eq.s32.totalorder %v2227_v40, 0  ;;  %vm2228_vm13 = vcmp.lt.s32.totalorder %v2227_v40, 2 }
 0xdd0   :  { %v1904_v57 = vor.u32 4788187, %v1903_v15  ;;  %v1989_v8 = vadd.s32 536870912, %v1988_v18  ;;  %vm2226_vm14 = vweird.f32 %v4000_v0  ;;  %vm1827_vm15 = vcmp.lt.s32.totalorder %v3997_v59, 0 }
 0xdd1   :  { %vm1826_vm0 = vcmp.le.f32.partialorder %v1825_v9, 0.7853982  ;;  %v1912_v39 = vsel %vm1827_vm15, %v1911_v30, %v4187_v14  ;;  %v1984_v9 = vadd.s32 %v4236_v63, %v4246_v54  ;;  %v2558_v14 = vadd.s32 3, %v4157_v55 }
 0xdd2   :  { %v1905_v34 = vand.u32 2147483647, %v1904_v57  ;;  %v4285_v31 = vshrl.u32 %v1989_v8, 30  ;;  %v1914_v45 = vsel %vm1826_vm0, 0, %v1912_v39  ;;  %vm1917_vm10 = vweird.f32 %v3997_v59 }
 0xdd3   :  { %v4283_v16 = vpop.eup %3324  ;;  %v2350_v49 = vadd.s32 3, %v1914_v45  ;;  %v1918_v60 = vand.u32 3, %v1914_v45  ;;  %v2559_v63 = vand.u32 3, %v2558_v14 }
 0xdd4   :  { %v4287_v6 = vpop.eup %3326  ;;  %v2233_v56 = vxor.u32 2147483648, %v4283_v16  ;;  %v1908_v26 = vmul.f32 %v1907_v32, %v1905_v34  ;;  %v1991_v4 = vshll.u32 %v4285_v31, 30  ;;  %v2014_v32 = vsub.s32 4, %v4285_v31 }
 0xdd5   :  { %v2230_v23 = vxor.u32 2147483648, %v4287_v6  ;;  %v2351_v42 = vand.u32 3, %v2350_v49  ;;  %vm1919_vm4 = vcmp.lt.s32.totalorder %v1918_v60, 2  ;;  %vm1920_vm5 = vcmp.eq.s32.totalorder %v1918_v60, 0 }
 0xdd6   :  { %v2234_v50 = vsel %vm2232_vm11, %v2233_v56, %v4287_v6  ;;  %v1909_v19 = vxor.u32 2147483648, %v1908_v26  ;;  %v1992_v35 = vsub.s32 %v1988_v18, %v1991_v4  ;;  %vm1923_vm7 = vcmp.eq.s32.totalorder %v1918_v60, 2 }
 0xdd7   :  { %v2231_v21 = vsel %vm2229_vm12, %v4283_v16, %v2230_v23  ;;  %vm2353_vm8 = vcmp.eq.s32.totalorder %v2351_v42, 0  ;;  %vm2356_vm9 = vcmp.eq.s32.totalorder %v2351_v42, 2  ;;  %vm2352_vm11 = vcmp.lt.s32.totalorder %v2351_v42, 2 }
 0xdd8   :  { %v2235_v37 = vsel %vm2228_vm13, %v2231_v21, %v2234_v50  ;;  %v1910_v27 = vsel %vm1827_vm15, %v1909_v19, %v1908_v26  ;;  %v1994_v38 = vsub.s32 0, %v1992_v35  ;;  %vm2561_vm12 = vcmp.eq.s32.totalorder %v2559_v63, 0 }
 0xdd9   :  { %v2236_v22 = vsel %vm2226_vm14, nan, %v2235_v37  ;;  %v1913_v17 = vsel %vm1826_vm0, %v3997_v59, %v1910_v27  ;;  %vm2564_vm13 = vcmp.eq.s32.totalorder %v2559_v63, 2  ;;  %v2563_v8 = vsel %vm2561_vm12, %v4232_v44, %v2127_v48 }
 0xdda   :  { %2247 = vrot.lane.b32.xlu1 %v2236_v22, %s3356_s4  ;;  %3328 = vcosq.f32 %v1913_v17  ;;  %v2893_v53 = vmin.u32 %v1994_v38, %v1992_v35  ;;  %v2566_v34 = vsel %vm2564_vm13, %v2130_v52, %v4240_v47  ;;  %vm2560_vm15 = vcmp.lt.s32.totalorder %v2559_v63, 2  ;;  %v3344_v52 = vld [vmem:[%s4392_s0 + $0x10] sm:$0xff] }
 0xddb   :  { %3330 = vsinq.f32 %v1913_v17  ;;  %vm1930_vm0 = vcmp.lt.s32.totalorder %v4005_v10, 0  ;;  %v2567_v30 = vsel %vm2560_vm15, %v2563_v8, %v2566_v34  ;;  %v2662_v38 = vadd.s32 3, %v4279_v41 }
 0xddc   :  { %v1996_v61 = vclz %v2893_v53  ;;  %v2015_v48 = vsel %vm1930_vm0, %v2014_v32, %v4285_v31  ;;  %v2568_v47 = vsel %vm2123_vm6, nan, %v2567_v30  ;;  %v3345_v31 = vld [vmem:[%s4392_s0] sm:$0xff]  ;;  %vm2750_vm15 = vcmask 195584  }
 0xdde   :  { %v2894_v46 = vadd.s32 4294967294, %v1996_v61 }
 0xde0   :  { %vm2895_vm3 = vcmp.lt.s32.totalorder %v2894_v46, 0 }
 0xde1   :  { %v1999_v7 = vsel %vm2895_vm3, 0, %v2894_v46  ;;  %vm1929_vm3 = vcmp.le.f32.partialorder %v1928_v24, 0.7853982  ;;  %v2663_v46 = vand.u32 3, %v2662_v38 }
 0xde2   :  { %v2000_v25 = vsub.s32 32, %v1999_v7  ;;  %v2004_v58 = vsub.s32 4294967266, %v1999_v7  ;;  %v2001_v20 = vshll.u32 %v1992_v35, %v1999_v7  ;;  %v2017_v35 = vsel %vm1929_vm3, 0, %v2015_v48 }
 0xde3   :  { %v2454_v24 = vadd.s32 3, %v2017_v35  ;;  %v2021_v27 = vand.u32 3, %v2017_v35  ;;  %vm2668_vm12 = vcmp.eq.s32.totalorder %v2663_v46, 2  ;;  %vm2664_vm13 = vcmp.lt.s32.totalorder %v2663_v46, 2 }
 0xde4   :  { %v3329_v28 = vpop.eup %3328  ;;  %v2002_v1 = vshrl.u32 %v1984_v9, %v2000_v25  ;;  %v2005_v13 = vadd.s32 127, %v2004_v58  ;;  %v2670_v14 = vsel %vm2668_vm12, %v2233_v56, %v4287_v6 }
 0xde5   :  { %v3331_v5 = vpop.eup %3330  ;;  %v1924_v2 = vxor.u32 2147483648, %v3329_v28  ;;  %v2455_v39 = vand.u32 3, %v2454_v24  ;;  %vm2026_vm6 = vcmp.eq.s32.totalorder %v2021_v27, 2 }
 0xde6   :  { %v1921_v3 = vxor.u32 2147483648, %v3331_v5  ;;  %v2003_v11 = vor.u32 %v2002_v1, %v2001_v20  ;;  %v2006_v12 = vshll.u32 %v2005_v13, 23 }
 0xde7   :  { %v1925_v29 = vsel %vm1923_vm7, %v1924_v2, %v3331_v5  ;;  %v2358_v55 = vsel %vm2356_vm9, %v1924_v2, %v3331_v5  ;;  %vm2460_vm7 = vcmp.eq.s32.totalorder %v2455_v39, 2  ;;  %vm2020_vm9 = vweird.f32 %v4005_v10  ;;  %v3346_v5 = vld [vmem:[%s4392_s0 + $0x18] sm:$0xff] }
 0xde8   :  { %v1922_v54 = vsel %vm1920_vm5, %v3329_v28, %v1921_v3  ;;  %v2007_v33 = vor.u32 4788187, %v2006_v12  ;;  %v2355_v36 = vsel %vm2353_vm8, %v3329_v28, %v1921_v3  ;;  %v2010_v18 = vcvt.s32.f32 %v2003_v11 }
 0xde9   :  { %v1926_v62 = vsel %vm1919_vm4, %v1922_v54, %v1925_v29  ;;  %v2359_v40 = vsel %vm2352_vm11, %v2355_v36, %v2358_v55  ;;  %vm2023_vm4 = vcmp.eq.s32.totalorder %v2021_v27, 0  ;;  %vm2457_vm5 = vcmp.eq.s32.totalorder %v2455_v39, 0 }
 0xdea   :  { %v1927_v43 = vsel %vm1917_vm10, nan, %v1926_v62  ;;  %v2008_v15 = vand.u32 2147483647, %v2007_v33  ;;  %v2360_v4 = vsel %vm1917_vm10, nan, %v2359_v40  ;;  %vm2022_vm8 = vcmp.lt.s32.totalorder %v2021_v27, 2 }
 0xdeb   :  { %2241 = vrot.lane.b32.xlu0 %v1927_v43, %s3356_s4  ;;  %vm2456_vm10 = vcmp.lt.s32.totalorder %v2455_v39, 2  ;;  %vm2665_vm11 = vcmp.eq.s32.totalorder %v2663_v46, 0 }
 0xdec   :  { %v2011_v57 = vmul.f32 %v2010_v18, %v2008_v15  ;;  %v2667_v42 = vsel %vm2665_vm11, %v4283_v16, %v2230_v23  ;;  %v3347_v16 = vld [vmem:[%s4392_s0 + $0x8] sm:$0xff]  ;;  %s3359_s0 = smov 104  }
 0xded   :  { %v2671_v20 = vsel %vm2664_vm13, %v2667_v42, %v2670_v14 }
 0xdee   :  { %v2012_v26 = vxor.u32 2147483648, %v2011_v57  ;;  %v2672_v13 = vsel %vm2226_vm14, nan, %v2671_v20  ;;  %vm2741_vm14 = vcmask 64512  }
 0xdef   :  { %2677 = vrot.lane.b32.xlu0 %v2360_v4, %s3356_s4 }
 0xdf0   :  { %v1806_v50 = vpop.permute.xlu1 %1805  ;;  %v2013_v21 = vsel %vm1930_vm0, %v2012_v26, %v2011_v57 }
 0xdf1   :  { %v2016_v44 = vsel %vm1929_vm3, %v4005_v10, %v2013_v21  ;;  %v1815_v19 = vadd.f32 %v3344_v52, %v1806_v50 }
 0xdf2   :  { %3332 = vcosq.f32 %v2016_v44 }
 0xdf3   :  { %3334 = vsinq.f32 %v2016_v44  ;;  %2681 = vrot.lane.b32.xlu0 %v2568_v47, %s3356_s4  ;;  %v1804_v2 = vpop.permute.xlu0 %1803  ;;  %v1821_v56 = vmul.f32 1.442695, %v1815_v19 }
 0xdf4   :  { %v1802_v37 = vpop.permute.xlu1 %1801  ;;  %v1814_v6 = vadd.f32 %v3347_v16, %v1804_v2 }
 0xdf5   :  { %v1813_v22 = vadd.f32 %v3345_v31, %v1802_v37  ;;  %3336 = vpow2.f32 %v1821_v56 }
 0xdf6   :  { %v1819_v8 = vmul.f32 1.442695, %v1814_v6 }
 0xdf7   :  { %2701 = vrot.lane.b32.xlu0 %v1815_v19, %s3357_s22  ;;  %v1817_v36 = vmul.f32 1.442695, %v1813_v22 }
 0xdf8   :  { %v1808_v1 = vpop.permute.xlu1 %1807 }
 0xdf9   :  { %v1816_v23 = vadd.f32 %v3346_v5, %v1808_v1 }
 0xdfb   :  { %2697 = vrot.lane.b32.xlu0 %v1813_v22, %s3357_s22  ;;  %v1823_v3 = vmul.f32 1.442695, %v1816_v23 }
 0xdfc   :  { %v3333_v17 = vpop.eup %3332 }
 0xdfd   :  { %v3335_v53 = vpop.eup %3334  ;;  %v2027_v45 = vxor.u32 2147483648, %v3333_v17  ;;  %3338 = vpow2.f32 %v1823_v3 }
 0xdfe   :  { %v2024_v61 = vxor.u32 2147483648, %v3335_v53  ;;  %3340 = vpow2.f32 %v1817_v36 }
 0xdff   :  { %v2028_v49 = vsel %vm2026_vm6, %v2027_v45, %v3335_v53  ;;  %v2462_v9 = vsel %vm2460_vm7, %v2027_v45, %v3335_v53  ;;  %v3337_v11 = vpop.eup %3336  ;;  %3342 = vpow2.f32 %v1819_v8 }
 0xe00   :  { %v2025_v60 = vsel %vm2023_vm4, %v3333_v17, %v2024_v61  ;;  %v2459_v7 = vsel %vm2457_vm5, %v3333_v17, %v2024_v61 }
 0xe01   :  { %v2029_v41 = vsel %vm2022_vm8, %v2025_v60, %v2028_v49  ;;  %v2463_v58 = vsel %vm2456_vm10, %v2459_v7, %v2462_v9 }
 0xe02   :  { %v2030_v25 = vsel %vm2020_vm9, nan, %v2029_v41  ;;  %v2464_v28 = vsel %vm2020_vm9, nan, %v2463_v58 }
 0xe03   :  { %2243 = vrot.lane.b32.xlu1 %v2030_v25, %s3356_s4 }
 0xe07   :  { %2679 = vrot.lane.b32.xlu1 %v2464_v28, %s3356_s4  ;;  %v3339_v63 = vpop.eup %3338 }
 0xe08   :  { %v3341_v55 = vpop.eup %3340 }
 0xe09   :  { %v3343_v34 = vpop.eup %3342 }
 0xe0b   :  { %2683 = vrot.lane.b32.xlu1 %v2672_v13, %s3356_s4 }
 0xe0f   :  { %2703 = vrot.lane.b32.xlu1 %v1816_v23, %s3357_s22 }
 0xe13   :  { %2699 = vrot.lane.b32.xlu1 %v1814_v6, %s3357_s22 }
 0xe41   :  { %v2246_v12 = vpop.permute.xlu0 %2245 }
 0xe42   :  { %v2255_v29 = vmul.f32 %v3337_v11, %v2246_v12 }
 0xe44   :  { %2717 = vrot.lane.b32.xlu0 %v2255_v29, %s3358_s29 }
 0xe4c   :  { %v2248_v54 = vpop.permute.xlu1 %2247 }
 0xe4d   :  { %v2256_v33 = vmul.f32 %v3339_v63, %v2248_v54 }
 0xe4f   :  { %2719 = vrot.lane.b32.xlu1 %v2256_v33, %s3358_s29 }
 0xe5d   :  { %v2242_v62 = vpop.permute.xlu0 %2241 }
 0xe5e   :  { %v2253_v43 = vmul.f32 %v3341_v55, %v2242_v62 }
 0xe60   :  { %2713 = vrot.lane.b32.xlu0 %v2253_v43, %s3358_s29 }
 0xe61   :  { %v2678_v15 = vpop.permute.xlu0 %2677 }
 0xe62   :  { %v2689_v18 = vmul.f32 %v3341_v55, %v2678_v15 }
 0xe64   :  { %2729 = vrot.lane.b32.xlu0 %v2689_v18, %s3359_s0 }
 0xe65   :  { %v2682_v40 = vpop.permute.xlu0 %2681 }
 0xe66   :  { %v2691_v57 = vmul.f32 %v3337_v11, %v2682_v40 }
 0xe68   :  { %2733 = vrot.lane.b32.xlu0 %v2691_v57, %s3359_s0 }
 0xe69   :  { %v2702_v48 = vpop.permute.xlu0 %2701 }
 0xe6a   :  { %v2744_v31 = vsel %vm2741_vm14, %v2702_v48, %v3995_v51 }
 0xe6d   :  { %v2698_v44 = vpop.permute.xlu0 %2697 }
 0xe6e   :  { %v2742_v19 = vsel %vm2741_vm14, %v2698_v44, %v3997_v59 }
 0xe75   :  { %v2244_v32 = vpop.permute.xlu1 %2243 }
 0xe76   :  { %v2254_v26 = vmul.f32 %v3343_v34, %v2244_v32 }
 0xe78   :  { %2715 = vrot.lane.b32.xlu1 %v2254_v26, %s3358_s29 }
 0xe79   :  { %v2680_v4 = vpop.permute.xlu1 %2679 }
 0xe7a   :  { %v2690_v50 = vmul.f32 %v3343_v34, %v2680_v4 }
 0xe7c   :  { %2731 = vrot.lane.b32.xlu1 %v2690_v50, %s3359_s0 }
 0xe7d   :  { %v2684_v30 = vpop.permute.xlu1 %2683 }
 0xe7e   :  { %v2692_v21 = vmul.f32 %v3339_v63, %v2684_v30 }
 0xe80   :  { %2735 = vrot.lane.b32.xlu1 %v2692_v21, %s3359_s0 }
 0xe81   :  { %v2704_v22 = vpop.permute.xlu1 %2703 }
 0xe82   :  { %v2745_v49 = vsel %vm2741_vm14, %v2704_v22, %v4000_v0 }
 0xe85   :  { %v2700_v59 = vpop.permute.xlu1 %2699 }
 0xe86   :  { %v2743_v45 = vsel %vm2741_vm14, %v2700_v59, %v4005_v10 }
 0xeb6   :  { %v2718_v47 = vpop.permute.xlu0 %2717 }
 0xeb7   :  { %v2748_v27 = vsel %vm176_vm1, %v2744_v31, %v2718_v47 }
 0xec1   :  { %v2720_v17 = vpop.permute.xlu1 %2719 }
 0xec2   :  { %v2749_v60 = vsel %vm176_vm1, %v2745_v49, %v2720_v17 }
 0xed2   :  { %v2714_v52 = vpop.permute.xlu0 %2713 }
 0xed3   :  { %v2746_v35 = vsel %vm176_vm1, %v2742_v19, %v2714_v52 }
 0xed6   :  { %v2730_v37 = vpop.permute.xlu0 %2729 }
 0xed7   :  { %v2751_v24 = vsel %vm2750_vm15, %v2746_v35, %v2730_v37 }
 0xed8   :  { %2755 = vst.msk [vmem:[%s4396_s5] sm:$0xff] %vm340_vm2, %v2751_v24 }
 0xeda   :  { %v2734_v38 = vpop.permute.xlu0 %2733 }
 0xedb   :  { %v2753_v39 = vsel %vm2750_vm15, %v2748_v27, %v2734_v38 }
 0xedc   :  { %2757 = vst.msk [vmem:[%s4396_s5 + $0x10] sm:$0xff] %vm340_vm2, %v2753_v39 }
 0xeea   :  { %v2716_v53 = vpop.permute.xlu1 %2715 }
 0xeeb   :  { %v2747_v61 = vsel %vm176_vm1, %v2743_v45, %v2716_v53 }
 0xeee   :  { %v2732_v51 = vpop.permute.xlu1 %2731 }
 0xeef   :  { %v2752_v46 = vsel %vm2750_vm15, %v2747_v61, %v2732_v51 }
 0xef0   :  { %2756 = vst.msk [vmem:[%s4396_s5 + $0x8] sm:$0xff] %vm340_vm2, %v2752_v46 }
 0xef2   :  { %v2736_v7 = vpop.permute.xlu1 %2735 }
 0xef3   :  { %v2754_v9 = vsel %vm2750_vm15, %v2749_v60, %v2736_v7 }
 0xef4   :  { %2758 = vst.msk [vmem:[%s4396_s5 + $0x18] sm:$0xff] %vm340_vm2, %v2754_v9 }

</bundles_post_ra>
